<compile_context>
chip_gen: v6e
topology: v6e:2x2x1
jax: 0.10.0
libtpu: 0.0.40
codegen_flags: <defaults>
</compile_context>

<pallas_src>
import functools

import jax
import jax.numpy as jnp
from jax.experimental import pallas as pl
from jax.experimental.pallas import tpu as pltpu

LANE = 128      # vreg lane count
SUBLANE = 8     # f32 sublane count


def _round_up(x, m):
    return (x + m - 1) // m * m


def rnn_block_kernel(x_ref, h0_ref, wih_h_ref, whh_h_ref, bh_ref,
                     wih_o_ref, whh_o_ref, bo_ref,
                     logp_ref, hfin_ref,
                     h_scr, ph_scr, po_scr,
                     *, bp, t_block, seq_len, output_size, guard_tail):
    """Processes one block of `t_block` timesteps.

    x_ref     : [Tt*Bp, I]   inputs for this time block (time-major, flattened)
    h0_ref    : [Bp, Hp]     initial hidden (padded), read only at block 0
    wih_h_ref : [I,  Hp]     input->hidden weight      (cols >= H are zero)
    whh_h_ref : [Hp, Hp]     hidden->hidden weight     (rows/cols >= H are zero)
    bh_ref    : [1,  Hp]     hidden bias               (cols >= H are zero)
    wih_o_ref : [I,  Op]     input->logits weight      (cols >= O are zero)
    whh_o_ref : [Hp, Op]     hidden->logits weight
    bo_ref    : [1,  Op]     logits bias
    logp_ref  : [Tt*Bp, Op]  per-step log-probs (lanes >= O are junk, sliced off)
    hfin_ref  : [Bp, Hp]     final hidden (constant index_map -> VMEM resident)
    h_scr     : [Bp, Hp]     VMEM scratch carrying hidden state across blocks
    ph_scr    : [Tt*Bp, Hp]  VMEM scratch: precomputed x @ W_ih_h + b_h
    po_scr    : [Tt*Bp, Op]  VMEM scratch: precomputed x @ W_ih_o + b_o
    """
    blk = pl.program_id(0)

    @pl.when(blk == 0)
    def _():
        h_scr[...] = h0_ref[...]

    # ---- Phase 1 (off the recurrence critical path): one big-M GEMM for the
    # non-recurrent contribution of all t_block timesteps, biases folded in.
    x = x_ref[...]                                                 # [Tt*Bp, I]
    ph_scr[...] = (jnp.dot(x, wih_h_ref[...],
                           preferred_element_type=jnp.float32) + bh_ref[...])
    po_scr[...] = (jnp.dot(x, wih_o_ref[...],
                           preferred_element_type=jnp.float32) + bo_ref[...])

    # ---- Hoisted (per-block constant) additive log-softmax mask:
    # 0 on real logit lanes, -1e30 on padding lanes.
    lane = jax.lax.broadcasted_iota(jnp.int32, (1, po_scr.shape[-1]), 1)
    lane_mask = jnp.where(lane < output_size,
                          jnp.float32(0.0), jnp.float32(-1e30))

    # ---- Phase 2: serial recurrence, fully unrolled (t_block is static).
    h = h_scr[...]                                                 # [Bp, Hp]
    for tt in range(t_block):
        rows = pl.ds(tt * bp, bp)
        p_h = ph_scr[rows, :]                                      # [Bp, Hp]
        p_o = po_scr[rows, :]                                      # [Bp, Op]

        # Recurrence critical path: one [Bp,Hp]x[Hp,Hp] matmul + one add.
        # (Pad lanes of h stay zero because W_hh cols >= H and b_h pads are 0.)
        h_new = p_h + jnp.dot(h, whh_h_ref[...],
                              preferred_element_type=jnp.float32)

        # Logits head + masked log-softmax (off the recurrence critical path;
        # uses the *incoming* hidden h, matching i2o(cat(x, hidden))).
        logits = p_o + jnp.dot(h, whh_o_ref[...],
                               preferred_element_type=jnp.float32)
        masked = logits + lane_mask
        m = jnp.max(masked, axis=-1, keepdims=True)
        shifted = masked - m
        lse = jnp.log(jnp.sum(jnp.exp(shifted), axis=-1, keepdims=True))
        logp_ref[rows, :] = shifted - lse

        if guard_tail:
            # Padded tail timesteps (t >= seq_len) must not advance the hidden.
            t_global = blk * t_block + tt
            step_vec = jnp.full((bp, 1), t_global, dtype=jnp.int32)
            h = jnp.where(step_vec < seq_len, h_new, h)
        else:
            h = h_new

    h_scr[...] = h
    hfin_ref[...] = h


def pack_params(wh_t, bh, wo_t, bo, input_size, hidden_size, output_size):
    """Split & pad the stacked [I+H, *] weights into lane-dense kernel operands.

    NOTE: rows >= H of W_hh_* and cols >= H / >= O of every operand are zero;
    the kernel's carried hidden relies on this to keep its padding lanes at 0.
    """
    I, H, O = input_size, hidden_size, output_size
    Hp = _round_up(max(H, 1), LANE)
    Op = _round_up(max(O, 1), LANE)
    wih_h = jnp.zeros((I, Hp), jnp.float32).at[:, :H].set(wh_t[:I])
    whh_h = jnp.zeros((Hp, Hp), jnp.float32).at[:H, :H].set(wh_t[I:])
    b_h = jnp.zeros((1, Hp), jnp.float32).at[:, :H].set(bh)
    wih_o = jnp.zeros((I, Op), jnp.float32).at[:, :O].set(wo_t[:I])
    whh_o = jnp.zeros((Hp, Op), jnp.float32).at[:H, :O].set(wo_t[I:])
    b_o = jnp.zeros((1, Op), jnp.float32).at[:, :O].set(bo)
    return wih_h, whh_h, b_h, wih_o, whh_o, b_o


def rnn_forward_seq(x_seq, h0, wh_t, bh, wo_t, bo, *, t_block=32):
    """Run the RNN cell over a whole sequence in ONE pallas_call.

    x_seq : [T, B, I]  inputs per timestep
    h0    : [B, H]     initial hidden state
    Returns (log_probs [T, B, O], final_hidden [B, H]).
    """
    T, B, I = x_seq.shape
    H = wh_t.shape[1]
    O = wo_t.shape[1]
    Hp = _round_up(max(H, 1), LANE)
    Op = _round_up(max(O, 1), LANE)
    Bp = _round_up(max(B, SUBLANE), SUBLANE)
    Tt = max(1, min(t_block, T))
    num_blocks = pl.cdiv(T, Tt)
    Tp = num_blocks * Tt

    wih_h, whh_h, b_h, wih_o, whh_o, b_o = pack_params(
        wh_t, bh, wo_t, bo, I, H, O)

    x_pad = jnp.zeros((Tp, Bp, I), jnp.float32).at[:T, :B, :].set(x_seq)
    x_flat = x_pad.reshape(Tp * Bp, I)           # time-major: row = t*Bp + b
    h0_pad = jnp.zeros((Bp, Hp), jnp.float32).at[:B, :H].set(h0)

    kernel = functools.partial(
        rnn_block_kernel, bp=Bp, t_block=Tt, seq_len=T, output_size=O,
        guard_tail=(Tp != T))

    # TODO(synk): for large batches on v7x, add a leading 'parallel' batch grid
    # axis so the batch-independent recurrence is split across both TensorCores.
    logp_flat, h_fin = pl.pallas_call(
        kernel,
        out_shape=(jax.ShapeDtypeStruct((Tp * Bp, Op), jnp.float32),
                   jax.ShapeDtypeStruct((Bp, Hp), jnp.float32)),
        grid=(num_blocks,),
        in_specs=[
            pl.BlockSpec((Tt * Bp, I), lambda b: (b, 0)),   # x (time block)
            pl.BlockSpec((Bp, Hp), lambda b: (0, 0)),       # h0
            pl.BlockSpec((I, Hp), lambda b: (0, 0)),        # W_ih (hidden head)
            pl.BlockSpec((Hp, Hp), lambda b: (0, 0)),       # W_hh (hidden head)
            pl.BlockSpec((1, Hp), lambda b: (0, 0)),        # b    (hidden head)
            pl.BlockSpec((I, Op), lambda b: (0, 0)),        # W_ih (logits head)
            pl.BlockSpec((Hp, Op), lambda b: (0, 0)),       # W_hh (logits head)
            pl.BlockSpec((1, Op), lambda b: (0, 0)),        # b    (logits head)
        ],
        out_specs=(
            pl.BlockSpec((Tt * Bp, Op), lambda b: (b, 0)),  # per-step log-probs
            pl.BlockSpec((Bp, Hp), lambda b: (0, 0)),       # final hidden
        ),
        scratch_shapes=[
            pltpu.VMEM((Bp, Hp), jnp.float32),              # hidden carry
            pltpu.VMEM((Tt * Bp, Hp), jnp.float32),         # precomputed P_h
            pltpu.VMEM((Tt * Bp, Op), jnp.float32),         # precomputed P_o
        ],
        compiler_params=pltpu.CompilerParams(
            dimension_semantics=("arbitrary",)),            # time is sequential
    )(x_flat, h0_pad, wih_h, whh_h, b_h, wih_o, whh_o, b_o)

    log_probs = logp_flat.reshape(Tp, Bp, Op)[:T, :B, :O]
    final_hidden = h_fin[:B, :H]
    return log_probs, final_hidden


def rnn_forward(inp, hidden, wh_t, bh, wo_t, bo):
    """Mirrors RNN.forward (single step): returns (log_softmax_output, new_hidden)."""
    logp, h_new = rnn_forward_seq(inp[None], hidden, wh_t, bh, wo_t, bo)
    return logp[0], h_new


def init_linear_params(key, in_features, out_features):
    """Deterministic init matching nn.Linear's U(-1/sqrt(fan_in), 1/sqrt(fan_in))."""
    kw, kb = jax.random.split(key)
    bound = 1.0 / jnp.sqrt(jnp.float32(in_features))
    # stored pre-transposed: [in_features, out_features]
    w_t = jax.random.uniform(kw, (in_features, out_features), jnp.float32, -bound, bound)
    b = jax.random.uniform(kb, (1, out_features), jnp.float32, -bound, bound)
    return w_t, b


if __name__ == "__main__":
    batch = 2
    input_size = 16
    hidden_size = 32
    output_size = 8
    seq_len = 8

    key = jax.random.PRNGKey(0)
    k_x, k_i2h, k_i2o = jax.random.split(key, 3)

    x_seq = jax.random.normal(k_x, (seq_len, batch, input_size), jnp.float32)
    h0 = jnp.zeros((batch, hidden_size), jnp.float32)  # initHidden broadcast to batch

    wh_t, bh = init_linear_params(k_i2h, input_size + hidden_size, hidden_size)
    wo_t, bo = init_linear_params(k_i2o, input_size + hidden_size, output_size)

    # Fused multi-timestep kernel (one pallas_call for the whole sequence).
    out_seq, h_final = rnn_forward_seq(x_seq, h0, wh_t, bh, wo_t, bo)
    # Single-step path (exact module.forward semantics).
    out_1, h_1 = rnn_forward(x_seq[0], h0, wh_t, bh, wo_t, bo)
    jax.block_until_ready((out_seq, h_final, out_1, h_1))

    # Plain-JAX reference (matches the PyTorch module).
    def ref_step(x, h):
        combined = jnp.concatenate([x, h], axis=1)
        h_new = combined @ wh_t + bh
        logits = combined @ wo_t + bo
        return jax.nn.log_softmax(logits, axis=1), h_new

    ref_outs = []
    h_ref = h0
    for t in range(seq_len):
        o_ref, h_ref = ref_step(x_seq[t], h_ref)
        ref_outs.append(o_ref)
    ref_outs = jnp.stack(ref_outs)

    assert jnp.allclose(out_seq, ref_outs, atol=1e-4), "sequence output mismatch"
    assert jnp.allclose(h_final, h_ref, atol=1e-4), "final hidden mismatch"
    o0_ref, h0_ref_step = ref_step(x_seq[0], h0)
    assert jnp.allclose(out_1, o0_ref, atol=1e-4), "single-step output mismatch"
    assert jnp.allclose(h_1, h0_ref_step, atol=1e-4), "single-step hidden mismatch"

    print("KERNEL_OK")
</pallas_src>

<mosaic_0001>
module attributes {stable_mosaic.version = 11 : i64} {
  func.func @rnn_block_kernel(%arg0: i32, %arg1: memref<64x16xf32, #tpu.memory_space<vmem>>, %arg2: memref<8x128xf32, #tpu.memory_space<vmem>>, %arg3: memref<16x128xf32, #tpu.memory_space<vmem>>, %arg4: memref<128x128xf32, #tpu.memory_space<vmem>>, %arg5: memref<1x128xf32, #tpu.memory_space<vmem>>, %arg6: memref<16x128xf32, #tpu.memory_space<vmem>>, %arg7: memref<128x128xf32, #tpu.memory_space<vmem>>, %arg8: memref<1x128xf32, #tpu.memory_space<vmem>>, %arg9: memref<64x128xf32, #tpu.memory_space<vmem>>, %arg10: memref<8x128xf32, #tpu.memory_space<vmem>>, %arg11: memref<8x128xf32, #tpu.memory_space<vmem>>, %arg12: memref<64x128xf32, #tpu.memory_space<vmem>>, %arg13: memref<64x128xf32, #tpu.memory_space<vmem>>) attributes {dimension_semantics = [#tpu.dimension_semantics<arbitrary>], iteration_bounds = array<i64: 1>, scalar_prefetch = 0 : i64, scratch_operands = 3 : i64, tpu.core_type = #tpu.core_type<tc>, window_params = [{transform_indices = @transform_0, window_bounds = array<i64: 64, 16>}, {pipeline_mode = #tpu.pipeline_mode<synchronous>, transform_indices = @transform_1, window_bounds = array<i64: 8, 128>}, {pipeline_mode = #tpu.pipeline_mode<synchronous>, transform_indices = @transform_2, window_bounds = array<i64: 16, 128>}, {pipeline_mode = #tpu.pipeline_mode<synchronous>, transform_indices = @transform_3, window_bounds = array<i64: 128, 128>}, {pipeline_mode = #tpu.pipeline_mode<synchronous>, transform_indices = @transform_4, window_bounds = array<i64: 1, 128>}, {pipeline_mode = #tpu.pipeline_mode<synchronous>, transform_indices = @transform_5, window_bounds = array<i64: 16, 128>}, {pipeline_mode = #tpu.pipeline_mode<synchronous>, transform_indices = @transform_6, window_bounds = array<i64: 128, 128>}, {pipeline_mode = #tpu.pipeline_mode<synchronous>, transform_indices = @transform_7, window_bounds = array<i64: 1, 128>}, {transform_indices = @transform_8, window_bounds = array<i64: 64, 128>}, {pipeline_mode = #tpu.pipeline_mode<synchronous>, transform_indices = @transform_9, window_bounds = array<i64: 8, 128>}]} {
    %c0_i32 = arith.constant 0 : i32
    %0 = arith.cmpi eq, %arg0, %c0_i32 : i32
    %1 = arith.extui %0 : i1 to i32
    %c0_i32_0 = arith.constant 0 : i32
    %2 = arith.cmpi ne, %1, %c0_i32_0 : i32
    scf.if %2 {
      %c0_128 = arith.constant 0 : index
      %c0_129 = arith.constant 0 : index
      %193 = vector.load %arg2[%c0_128, %c0_129] : memref<8x128xf32, #tpu.memory_space<vmem>>, vector<8x128xf32>
      %c0_130 = arith.constant 0 : index
      %c0_131 = arith.constant 0 : index
      %194 = vector.load %arg11[%c0_130, %c0_131] : memref<8x128xf32, #tpu.memory_space<vmem>>, vector<8x128xf32>
      tpu.vector_store %arg11[%c0_130, %c0_131], %193 {strides = array<i32>} : memref<8x128xf32, #tpu.memory_space<vmem>>, vector<8x128xf32>,
    } else {
    }
    %c0 = arith.constant 0 : index
    %c0_1 = arith.constant 0 : index
    %3 = vector.load %arg1[%c0, %c0_1] : memref<64x16xf32, #tpu.memory_space<vmem>>, vector<64x16xf32>
    %c0_2 = arith.constant 0 : index
    %c0_3 = arith.constant 0 : index
    %4 = vector.load %arg3[%c0_2, %c0_3] : memref<16x128xf32, #tpu.memory_space<vmem>>, vector<16x128xf32>
    %cst = arith.constant dense<0.000000e+00> : vector<64x128xf32>
    %5 = tpu.matmul %3, %4, %cst {dimension_numbers = #tpu.dot_dimension_numbers<[1], [0], [0], [1], [0, 0, 1, 1], [], []>} : vector<64x16xf32>, vector<16x128xf32>, vector<64x128xf32> -> vector<64x128xf32>
    %c0_4 = arith.constant 0 : index
    %c0_5 = arith.constant 0 : index
    %6 = vector.load %arg5[%c0_4, %c0_5] : memref<1x128xf32, #tpu.memory_space<vmem>>, vector<1x128xf32>
    %7 = vector.broadcast %6 : vector<1x128xf32> to vector<64x128xf32>
    %8 = arith.addf %5, %7 : vector<64x128xf32>
    %c0_6 = arith.constant 0 : index
    %c0_7 = arith.constant 0 : index
    %9 = vector.load %arg12[%c0_6, %c0_7] : memref<64x128xf32, #tpu.memory_space<vmem>>, vector<64x128xf32>
    tpu.vector_store %arg12[%c0_6, %c0_7], %8 {strides = array<i32>} : memref<64x128xf32, #tpu.memory_space<vmem>>, vector<64x128xf32>,
    %c0_8 = arith.constant 0 : index
    %c0_9 = arith.constant 0 : index
    %10 = vector.load %arg6[%c0_8, %c0_9] : memref<16x128xf32, #tpu.memory_space<vmem>>, vector<16x128xf32>
    %cst_10 = arith.constant dense<0.000000e+00> : vector<64x128xf32>
    %11 = tpu.matmul %3, %10, %cst_10 {dimension_numbers = #tpu.dot_dimension_numbers<[1], [0], [0], [1], [0, 0, 1, 1], [], []>} : vector<64x16xf32>, vector<16x128xf32>, vector<64x128xf32> -> vector<64x128xf32>
    %c0_11 = arith.constant 0 : index
    %c0_12 = arith.constant 0 : index
    %12 = vector.load %arg8[%c0_11, %c0_12] : memref<1x128xf32, #tpu.memory_space<vmem>>, vector<1x128xf32>
    %13 = vector.broadcast %12 : vector<1x128xf32> to vector<64x128xf32>
    %14 = arith.addf %11, %13 : vector<64x128xf32>
    %c0_13 = arith.constant 0 : index
    %c0_14 = arith.constant 0 : index
    %15 = vector.load %arg13[%c0_13, %c0_14] : memref<64x128xf32, #tpu.memory_space<vmem>>, vector<64x128xf32>
    tpu.vector_store %arg13[%c0_13, %c0_14], %14 {strides = array<i32>} : memref<64x128xf32, #tpu.memory_space<vmem>>, vector<64x128xf32>,
    %16 = tpu.iota {dimensions = array<i32: 1>} : vector<1x128xi32>
    %c8_i32 = arith.constant 8 : i32
    %17 = vector.broadcast %c8_i32 : i32 to vector<1x128xi32>
    %18 = arith.cmpi slt, %16, %17 : vector<1x128xi32>
    %cst_15 = arith.constant 0.000000e+00 : f32
    %cst_16 = arith.constant -1.000000e+30 : f32
    %19 = vector.broadcast %cst_15 : f32 to vector<1x128xf32>
    %20 = vector.broadcast %cst_16 : f32 to vector<1x128xf32>
    %21 = arith.select %18, %19, %20 : vector<1x128xi1>, vector<1x128xf32>
    %c0_17 = arith.constant 0 : index
    %c0_18 = arith.constant 0 : index
    %22 = vector.load %arg11[%c0_17, %c0_18] : memref<8x128xf32, #tpu.memory_space<vmem>>, vector<8x128xf32>
    %c0_19 = arith.constant 0 : index
    %c0_20 = arith.constant 0 : index
    %23 = vector.load %arg12[%c0_19, %c0_20] : memref<64x128xf32, #tpu.memory_space<vmem>>, vector<8x128xf32>
    %c0_21 = arith.constant 0 : index
    %c0_22 = arith.constant 0 : index
    %24 = vector.load %arg13[%c0_21, %c0_22] : memref<64x128xf32, #tpu.memory_space<vmem>>, vector<8x128xf32>
    %c0_23 = arith.constant 0 : index
    %c0_24 = arith.constant 0 : index
    %25 = vector.load %arg4[%c0_23, %c0_24] : memref<128x128xf32, #tpu.memory_space<vmem>>, vector<128x128xf32>
    %cst_25 = arith.constant dense<0.000000e+00> : vector<8x128xf32>
    %26 = tpu.matmul %22, %25, %cst_25 {dimension_numbers = #tpu.dot_dimension_numbers<[1], [0], [0], [1], [0, 0, 1, 1], [], []>} : vector<8x128xf32>, vector<128x128xf32>, vector<8x128xf32> -> vector<8x128xf32>
    %27 = arith.addf %23, %26 : vector<8x128xf32>
    %c0_26 = arith.constant 0 : index
    %c0_27 = arith.constant 0 : index
    %28 = vector.load %arg7[%c0_26, %c0_27] : memref<128x128xf32, #tpu.memory_space<vmem>>, vector<128x128xf32>
    %cst_28 = arith.constant dense<0.000000e+00> : vector<8x128xf32>
    %29 = tpu.matmul %22, %28, %cst_28 {dimension_numbers = #tpu.dot_dimension_numbers<[1], [0], [0], [1], [0, 0, 1, 1], [], []>} : vector<8x128xf32>, vector<128x128xf32>, vector<8x128xf32> -> vector<8x128xf32>
    %30 = arith.addf %24, %29 : vector<8x128xf32>
    %31 = vector.broadcast %21 : vector<1x128xf32> to vector<8x128xf32>
    %32 = arith.addf %30, %31 : vector<8x128xf32>
    %cst_29 = arith.constant dense<0xFF800000> : vector<8xf32>
    %33 = vector.multi_reduction <maximumf>, %32, %cst_29 [1] : vector<8x128xf32> to vector<8xf32>
    %34 = vector.shape_cast %33 : vector<8xf32> to vector<8x1xf32>
    %35 = vector.broadcast %34 : vector<8x1xf32> to vector<8x128xf32>
    %36 = arith.subf %32, %35 : vector<8x128xf32>
    %37 = math.exp %36 : vector<8x128xf32>
    %cst_30 = arith.constant dense<0.000000e+00> : vector<8xf32>
    %38 = vector.multi_reduction <add>, %37, %cst_30 [1] : vector<8x128xf32> to vector<8xf32>
    %39 = vector.shape_cast %38 : vector<8xf32> to vector<8x1xf32>
    %40 = math.log %39 : vector<8x1xf32>
    %41 = vector.broadcast %40 : vector<8x1xf32> to vector<8x128xf32>
    %42 = arith.subf %36, %41 : vector<8x128xf32>
    %c0_31 = arith.constant 0 : index
    %c0_32 = arith.constant 0 : index
    %43 = vector.load %arg9[%c0_31, %c0_32] : memref<64x128xf32, #tpu.memory_space<vmem>>, vector<8x128xf32>
    tpu.vector_store %arg9[%c0_31, %c0_32], %42 {strides = array<i32>} : memref<64x128xf32, #tpu.memory_space<vmem>>, vector<8x128xf32>,
    %c8 = arith.constant 8 : index
    %c0_33 = arith.constant 0 : index
    %44 = vector.load %arg12[%c8, %c0_33] : memref<64x128xf32, #tpu.memory_space<vmem>>, vector<8x128xf32>
    %c8_34 = arith.constant 8 : index
    %c0_35 = arith.constant 0 : index
    %45 = vector.load %arg13[%c8_34, %c0_35] : memref<64x128xf32, #tpu.memory_space<vmem>>, vector<8x128xf32>
    %c0_36 = arith.constant 0 : index
    %c0_37 = arith.constant 0 : index
    %46 = vector.load %arg4[%c0_36, %c0_37] : memref<128x128xf32, #tpu.memory_space<vmem>>, vector<128x128xf32>
    %cst_38 = arith.constant dense<0.000000e+00> : vector<8x128xf32>
    %47 = tpu.matmul %27, %46, %cst_38 {dimension_numbers = #tpu.dot_dimension_numbers<[1], [0], [0], [1], [0, 0, 1, 1], [], []>} : vector<8x128xf32>, vector<128x128xf32>, vector<8x128xf32> -> vector<8x128xf32>
    %48 = arith.addf %44, %47 : vector<8x128xf32>
    %c0_39 = arith.constant 0 : index
    %c0_40 = arith.constant 0 : index
    %49 = vector.load %arg7[%c0_39, %c0_40] : memref<128x128xf32, #tpu.memory_space<vmem>>, vector<128x128xf32>
    %cst_41 = arith.constant dense<0.000000e+00> : vector<8x128xf32>
    %50 = tpu.matmul %27, %49, %cst_41 {dimension_numbers = #tpu.dot_dimension_numbers<[1], [0], [0], [1], [0, 0, 1, 1], [], []>} : vector<8x128xf32>, vector<128x128xf32>, vector<8x128xf32> -> vector<8x128xf32>
    %51 = arith.addf %45, %50 : vector<8x128xf32>
    %52 = vector.broadcast %21 : vector<1x128xf32> to vector<8x128xf32>
    %53 = arith.addf %51, %52 : vector<8x128xf32>
    %cst_42 = arith.constant dense<0xFF800000> : vector<8xf32>
    %54 = vector.multi_reduction <maximumf>, %53, %cst_42 [1] : vector<8x128xf32> to vector<8xf32>
    %55 = vector.shape_cast %54 : vector<8xf32> to vector<8x1xf32>
    %56 = vector.broadcast %55 : vector<8x1xf32> to vector<8x128xf32>
    %57 = arith.subf %53, %56 : vector<8x128xf32>
    %58 = math.exp %57 : vector<8x128xf32>
    %cst_43 = arith.constant dense<0.000000e+00> : vector<8xf32>
    %59 = vector.multi_reduction <add>, %58, %cst_43 [1] : vector<8x128xf32> to vector<8xf32>
    %60 = vector.shape_cast %59 : vector<8xf32> to vector<8x1xf32>
    %61 = math.log %60 : vector<8x1xf32>
    %62 = vector.broadcast %61 : vector<8x1xf32> to vector<8x128xf32>
    %63 = arith.subf %57, %62 : vector<8x128xf32>
    %c8_44 = arith.constant 8 : index
    %c0_45 = arith.constant 0 : index
    %64 = vector.load %arg9[%c8_44, %c0_45] : memref<64x128xf32, #tpu.memory_space<vmem>>, vector<8x128xf32>
    tpu.vector_store %arg9[%c8_44, %c0_45], %63 {strides = array<i32>} : memref<64x128xf32, #tpu.memory_space<vmem>>, vector<8x128xf32>,
    %c16 = arith.constant 16 : index
    %c0_46 = arith.constant 0 : index
    %65 = vector.load %arg12[%c16, %c0_46] : memref<64x128xf32, #tpu.memory_space<vmem>>, vector<8x128xf32>
    %c16_47 = arith.constant 16 : index
    %c0_48 = arith.constant 0 : index
    %66 = vector.load %arg13[%c16_47, %c0_48] : memref<64x128xf32, #tpu.memory_space<vmem>>, vector<8x128xf32>
    %c0_49 = arith.constant 0 : index
    %c0_50 = arith.constant 0 : index
    %67 = vector.load %arg4[%c0_49, %c0_50] : memref<128x128xf32, #tpu.memory_space<vmem>>, vector<128x128xf32>
    %cst_51 = arith.constant dense<0.000000e+00> : vector<8x128xf32>
    %68 = tpu.matmul %48, %67, %cst_51 {dimension_numbers = #tpu.dot_dimension_numbers<[1], [0], [0], [1], [0, 0, 1, 1], [], []>} : vector<8x128xf32>, vector<128x128xf32>, vector<8x128xf32> -> vector<8x128xf32>
    %69 = arith.addf %65, %68 : vector<8x128xf32>
    %c0_52 = arith.constant 0 : index
    %c0_53 = arith.constant 0 : index
    %70 = vector.load %arg7[%c0_52, %c0_53] : memref<128x128xf32, #tpu.memory_space<vmem>>, vector<128x128xf32>
    %cst_54 = arith.constant dense<0.000000e+00> : vector<8x128xf32>
    %71 = tpu.matmul %48, %70, %cst_54 {dimension_numbers = #tpu.dot_dimension_numbers<[1], [0], [0], [1], [0, 0, 1, 1], [], []>} : vector<8x128xf32>, vector<128x128xf32>, vector<8x128xf32> -> vector<8x128xf32>
    %72 = arith.addf %66, %71 : vector<8x128xf32>
    %73 = vector.broadcast %21 : vector<1x128xf32> to vector<8x128xf32>
    %74 = arith.addf %72, %73 : vector<8x128xf32>
    %cst_55 = arith.constant dense<0xFF800000> : vector<8xf32>
    %75 = vector.multi_reduction <maximumf>, %74, %cst_55 [1] : vector<8x128xf32> to vector<8xf32>
    %76 = vector.shape_cast %75 : vector<8xf32> to vector<8x1xf32>
    %77 = vector.broadcast %76 : vector<8x1xf32> to vector<8x128xf32>
    %78 = arith.subf %74, %77 : vector<8x128xf32>
    %79 = math.exp %78 : vector<8x128xf32>
    %cst_56 = arith.constant dense<0.000000e+00> : vector<8xf32>
    %80 = vector.multi_reduction <add>, %79, %cst_56 [1] : vector<8x128xf32> to vector<8xf32>
    %81 = vector.shape_cast %80 : vector<8xf32> to vector<8x1xf32>
    %82 = math.log %81 : vector<8x1xf32>
    %83 = vector.broadcast %82 : vector<8x1xf32> to vector<8x128xf32>
    %84 = arith.subf %78, %83 : vector<8x128xf32>
    %c16_57 = arith.constant 16 : index
    %c0_58 = arith.constant 0 : index
    %85 = vector.load %arg9[%c16_57, %c0_58] : memref<64x128xf32, #tpu.memory_space<vmem>>, vector<8x128xf32>
    tpu.vector_store %arg9[%c16_57, %c0_58], %84 {strides = array<i32>} : memref<64x128xf32, #tpu.memory_space<vmem>>, vector<8x128xf32>,
    %c24 = arith.constant 24 : index
    %c0_59 = arith.constant 0 : index
    %86 = vector.load %arg12[%c24, %c0_59] : memref<64x128xf32, #tpu.memory_space<vmem>>, vector<8x128xf32>
    %c24_60 = arith.constant 24 : index
    %c0_61 = arith.constant 0 : index
    %87 = vector.load %arg13[%c24_60, %c0_61] : memref<64x128xf32, #tpu.memory_space<vmem>>, vector<8x128xf32>
    %c0_62 = arith.constant 0 : index
    %c0_63 = arith.constant 0 : index
    %88 = vector.load %arg4[%c0_62, %c0_63] : memref<128x128xf32, #tpu.memory_space<vmem>>, vector<128x128xf32>
    %cst_64 = arith.constant dense<0.000000e+00> : vector<8x128xf32>
    %89 = tpu.matmul %69, %88, %cst_64 {dimension_numbers = #tpu.dot_dimension_numbers<[1], [0], [0], [1], [0, 0, 1, 1], [], []>} : vector<8x128xf32>, vector<128x128xf32>, vector<8x128xf32> -> vector<8x128xf32>
    %90 = arith.addf %86, %89 : vector<8x128xf32>
    %c0_65 = arith.constant 0 : index
    %c0_66 = arith.constant 0 : index
    %91 = vector.load %arg7[%c0_65, %c0_66] : memref<128x128xf32, #tpu.memory_space<vmem>>, vector<128x128xf32>
    %cst_67 = arith.constant dense<0.000000e+00> : vector<8x128xf32>
    %92 = tpu.matmul %69, %91, %cst_67 {dimension_numbers = #tpu.dot_dimension_numbers<[1], [0], [0], [1], [0, 0, 1, 1], [], []>} : vector<8x128xf32>, vector<128x128xf32>, vector<8x128xf32> -> vector<8x128xf32>
    %93 = arith.addf %87, %92 : vector<8x128xf32>
    %94 = vector.broadcast %21 : vector<1x128xf32> to vector<8x128xf32>
    %95 = arith.addf %93, %94 : vector<8x128xf32>
    %cst_68 = arith.constant dense<0xFF800000> : vector<8xf32>
    %96 = vector.multi_reduction <maximumf>, %95, %cst_68 [1] : vector<8x128xf32> to vector<8xf32>
    %97 = vector.shape_cast %96 : vector<8xf32> to vector<8x1xf32>
    %98 = vector.broadcast %97 : vector<8x1xf32> to vector<8x128xf32>
    %99 = arith.subf %95, %98 : vector<8x128xf32>
    %100 = math.exp %99 : vector<8x128xf32>
    %cst_69 = arith.constant dense<0.000000e+00> : vector<8xf32>
    %101 = vector.multi_reduction <add>, %100, %cst_69 [1] : vector<8x128xf32> to vector<8xf32>
    %102 = vector.shape_cast %101 : vector<8xf32> to vector<8x1xf32>
    %103 = math.log %102 : vector<8x1xf32>
    %104 = vector.broadcast %103 : vector<8x1xf32> to vector<8x128xf32>
    %105 = arith.subf %99, %104 : vector<8x128xf32>
    %c24_70 = arith.constant 24 : index
    %c0_71 = arith.constant 0 : index
    %106 = vector.load %arg9[%c24_70, %c0_71] : memref<64x128xf32, #tpu.memory_space<vmem>>, vector<8x128xf32>
    tpu.vector_store %arg9[%c24_70, %c0_71], %105 {strides = array<i32>} : memref<64x128xf32, #tpu.memory_space<vmem>>, vector<8x128xf32>,
    %c32 = arith.constant 32 : index
    %c0_72 = arith.constant 0 : index
    %107 = vector.load %arg12[%c32, %c0_72] : memref<64x128xf32, #tpu.memory_space<vmem>>, vector<8x128xf32>
    %c32_73 = arith.constant 32 : index
    %c0_74 = arith.constant 0 : index
    %108 = vector.load %arg13[%c32_73, %c0_74] : memref<64x128xf32, #tpu.memory_space<vmem>>, vector<8x128xf32>
    %c0_75 = arith.constant 0 : index
    %c0_76 = arith.constant 0 : index
    %109 = vector.load %arg4[%c0_75, %c0_76] : memref<128x128xf32, #tpu.memory_space<vmem>>, vector<128x128xf32>
    %cst_77 = arith.constant dense<0.000000e+00> : vector<8x128xf32>
    %110 = tpu.matmul %90, %109, %cst_77 {dimension_numbers = #tpu.dot_dimension_numbers<[1], [0], [0], [1], [0, 0, 1, 1], [], []>} : vector<8x128xf32>, vector<128x128xf32>, vector<8x128xf32> -> vector<8x128xf32>
    %111 = arith.addf %107, %110 : vector<8x128xf32>
    %c0_78 = arith.constant 0 : index
    %c0_79 = arith.constant 0 : index
    %112 = vector.load %arg7[%c0_78, %c0_79] : memref<128x128xf32, #tpu.memory_space<vmem>>, vector<128x128xf32>
    %cst_80 = arith.constant dense<0.000000e+00> : vector<8x128xf32>
    %113 = tpu.matmul %90, %112, %cst_80 {dimension_numbers = #tpu.dot_dimension_numbers<[1], [0], [0], [1], [0, 0, 1, 1], [], []>} : vector<8x128xf32>, vector<128x128xf32>, vector<8x128xf32> -> vector<8x128xf32>
    %114 = arith.addf %108, %113 : vector<8x128xf32>
    %115 = vector.broadcast %21 : vector<1x128xf32> to vector<8x128xf32>
    %116 = arith.addf %114, %115 : vector<8x128xf32>
    %cst_81 = arith.constant dense<0xFF800000> : vector<8xf32>
    %117 = vector.multi_reduction <maximumf>, %116, %cst_81 [1] : vector<8x128xf32> to vector<8xf32>
    %118 = vector.shape_cast %117 : vector<8xf32> to vector<8x1xf32>
    %119 = vector.broadcast %118 : vector<8x1xf32> to vector<8x128xf32>
    %120 = arith.subf %116, %119 : vector<8x128xf32>
    %121 = math.exp %120 : vector<8x128xf32>
    %cst_82 = arith.constant dense<0.000000e+00> : vector<8xf32>
    %122 = vector.multi_reduction <add>, %121, %cst_82 [1] : vector<8x128xf32> to vector<8xf32>
    %123 = vector.shape_cast %122 : vector<8xf32> to vector<8x1xf32>
    %124 = math.log %123 : vector<8x1xf32>
    %125 = vector.broadcast %124 : vector<8x1xf32> to vector<8x128xf32>
    %126 = arith.subf %120, %125 : vector<8x128xf32>
    %c32_83 = arith.constant 32 : index
    %c0_84 = arith.constant 0 : index
    %127 = vector.load %arg9[%c32_83, %c0_84] : memref<64x128xf32, #tpu.memory_space<vmem>>, vector<8x128xf32>
    tpu.vector_store %arg9[%c32_83, %c0_84], %126 {strides = array<i32>} : memref<64x128xf32, #tpu.memory_space<vmem>>, vector<8x128xf32>,
    %c40 = arith.constant 40 : index
    %c0_85 = arith.constant 0 : index
    %128 = vector.load %arg12[%c40, %c0_85] : memref<64x128xf32, #tpu.memory_space<vmem>>, vector<8x128xf32>
    %c40_86 = arith.constant 40 : index
    %c0_87 = arith.constant 0 : index
    %129 = vector.load %arg13[%c40_86, %c0_87] : memref<64x128xf32, #tpu.memory_space<vmem>>, vector<8x128xf32>
    %c0_88 = arith.constant 0 : index
    %c0_89 = arith.constant 0 : index
    %130 = vector.load %arg4[%c0_88, %c0_89] : memref<128x128xf32, #tpu.memory_space<vmem>>, vector<128x128xf32>
    %cst_90 = arith.constant dense<0.000000e+00> : vector<8x128xf32>
    %131 = tpu.matmul %111, %130, %cst_90 {dimension_numbers = #tpu.dot_dimension_numbers<[1], [0], [0], [1], [0, 0, 1, 1], [], []>} : vector<8x128xf32>, vector<128x128xf32>, vector<8x128xf32> -> vector<8x128xf32>
    %132 = arith.addf %128, %131 : vector<8x128xf32>
    %c0_91 = arith.constant 0 : index
    %c0_92 = arith.constant 0 : index
    %133 = vector.load %arg7[%c0_91, %c0_92] : memref<128x128xf32, #tpu.memory_space<vmem>>, vector<128x128xf32>
    %cst_93 = arith.constant dense<0.000000e+00> : vector<8x128xf32>
    %134 = tpu.matmul %111, %133, %cst_93 {dimension_numbers = #tpu.dot_dimension_numbers<[1], [0], [0], [1], [0, 0, 1, 1], [], []>} : vector<8x128xf32>, vector<128x128xf32>, vector<8x128xf32> -> vector<8x128xf32>
    %135 = arith.addf %129, %134 : vector<8x128xf32>
    %136 = vector.broadcast %21 : vector<1x128xf32> to vector<8x128xf32>
    %137 = arith.addf %135, %136 : vector<8x128xf32>
    %cst_94 = arith.constant dense<0xFF800000> : vector<8xf32>
    %138 = vector.multi_reduction <maximumf>, %137, %cst_94 [1] : vector<8x128xf32> to vector<8xf32>
    %139 = vector.shape_cast %138 : vector<8xf32> to vector<8x1xf32>
    %140 = vector.broadcast %139 : vector<8x1xf32> to vector<8x128xf32>
    %141 = arith.subf %137, %140 : vector<8x128xf32>
    %142 = math.exp %141 : vector<8x128xf32>
    %cst_95 = arith.constant dense<0.000000e+00> : vector<8xf32>
    %143 = vector.multi_reduction <add>, %142, %cst_95 [1] : vector<8x128xf32> to vector<8xf32>
    %144 = vector.shape_cast %143 : vector<8xf32> to vector<8x1xf32>
    %145 = math.log %144 : vector<8x1xf32>
    %146 = vector.broadcast %145 : vector<8x1xf32> to vector<8x128xf32>
    %147 = arith.subf %141, %146 : vector<8x128xf32>
    %c40_96 = arith.constant 40 : index
    %c0_97 = arith.constant 0 : index
    %148 = vector.load %arg9[%c40_96, %c0_97] : memref<64x128xf32, #tpu.memory_space<vmem>>, vector<8x128xf32>
    tpu.vector_store %arg9[%c40_96, %c0_97], %147 {strides = array<i32>} : memref<64x128xf32, #tpu.memory_space<vmem>>, vector<8x128xf32>,
    %c48 = arith.constant 48 : index
    %c0_98 = arith.constant 0 : index
    %149 = vector.load %arg12[%c48, %c0_98] : memref<64x128xf32, #tpu.memory_space<vmem>>, vector<8x128xf32>
    %c48_99 = arith.constant 48 : index
    %c0_100 = arith.constant 0 : index
    %150 = vector.load %arg13[%c48_99, %c0_100] : memref<64x128xf32, #tpu.memory_space<vmem>>, vector<8x128xf32>
    %c0_101 = arith.constant 0 : index
    %c0_102 = arith.constant 0 : index
    %151 = vector.load %arg4[%c0_101, %c0_102] : memref<128x128xf32, #tpu.memory_space<vmem>>, vector<128x128xf32>
    %cst_103 = arith.constant dense<0.000000e+00> : vector<8x128xf32>
    %152 = tpu.matmul %132, %151, %cst_103 {dimension_numbers = #tpu.dot_dimension_numbers<[1], [0], [0], [1], [0, 0, 1, 1], [], []>} : vector<8x128xf32>, vector<128x128xf32>, vector<8x128xf32> -> vector<8x128xf32>
    %153 = arith.addf %149, %152 : vector<8x128xf32>
    %c0_104 = arith.constant 0 : index
    %c0_105 = arith.constant 0 : index
    %154 = vector.load %arg7[%c0_104, %c0_105] : memref<128x128xf32, #tpu.memory_space<vmem>>, vector<128x128xf32>
    %cst_106 = arith.constant dense<0.000000e+00> : vector<8x128xf32>
    %155 = tpu.matmul %132, %154, %cst_106 {dimension_numbers = #tpu.dot_dimension_numbers<[1], [0], [0], [1], [0, 0, 1, 1], [], []>} : vector<8x128xf32>, vector<128x128xf32>, vector<8x128xf32> -> vector<8x128xf32>
    %156 = arith.addf %150, %155 : vector<8x128xf32>
    %157 = vector.broadcast %21 : vector<1x128xf32> to vector<8x128xf32>
    %158 = arith.addf %156, %157 : vector<8x128xf32>
    %cst_107 = arith.constant dense<0xFF800000> : vector<8xf32>
    %159 = vector.multi_reduction <maximumf>, %158, %cst_107 [1] : vector<8x128xf32> to vector<8xf32>
    %160 = vector.shape_cast %159 : vector<8xf32> to vector<8x1xf32>
    %161 = vector.broadcast %160 : vector<8x1xf32> to vector<8x128xf32>
    %162 = arith.subf %158, %161 : vector<8x128xf32>
    %163 = math.exp %162 : vector<8x128xf32>
    %cst_108 = arith.constant dense<0.000000e+00> : vector<8xf32>
    %164 = vector.multi_reduction <add>, %163, %cst_108 [1] : vector<8x128xf32> to vector<8xf32>
    %165 = vector.shape_cast %164 : vector<8xf32> to vector<8x1xf32>
    %166 = math.log %165 : vector<8x1xf32>
    %167 = vector.broadcast %166 : vector<8x1xf32> to vector<8x128xf32>
    %168 = arith.subf %162, %167 : vector<8x128xf32>
    %c48_109 = arith.constant 48 : index
    %c0_110 = arith.constant 0 : index
    %169 = vector.load %arg9[%c48_109, %c0_110] : memref<64x128xf32, #tpu.memory_space<vmem>>, vector<8x128xf32>
    tpu.vector_store %arg9[%c48_109, %c0_110], %168 {strides = array<i32>} : memref<64x128xf32, #tpu.memory_space<vmem>>, vector<8x128xf32>,
    %c56 = arith.constant 56 : index
    %c0_111 = arith.constant 0 : index
    %170 = vector.load %arg12[%c56, %c0_111] : memref<64x128xf32, #tpu.memory_space<vmem>>, vector<8x128xf32>
    %c56_112 = arith.constant 56 : index
    %c0_113 = arith.constant 0 : index
    %171 = vector.load %arg13[%c56_112, %c0_113] : memref<64x128xf32, #tpu.memory_space<vmem>>, vector<8x128xf32>
    %c0_114 = arith.constant 0 : index
    %c0_115 = arith.constant 0 : index
    %172 = vector.load %arg4[%c0_114, %c0_115] : memref<128x128xf32, #tpu.memory_space<vmem>>, vector<128x128xf32>
    %cst_116 = arith.constant dense<0.000000e+00> : vector<8x128xf32>
    %173 = tpu.matmul %153, %172, %cst_116 {dimension_numbers = #tpu.dot_dimension_numbers<[1], [0], [0], [1], [0, 0, 1, 1], [], []>} : vector<8x128xf32>, vector<128x128xf32>, vector<8x128xf32> -> vector<8x128xf32>
    %174 = arith.addf %170, %173 : vector<8x128xf32>
    %c0_117 = arith.constant 0 : index
    %c0_118 = arith.constant 0 : index
    %175 = vector.load %arg7[%c0_117, %c0_118] : memref<128x128xf32, #tpu.memory_space<vmem>>, vector<128x128xf32>
    %cst_119 = arith.constant dense<0.000000e+00> : vector<8x128xf32>
    %176 = tpu.matmul %153, %175, %cst_119 {dimension_numbers = #tpu.dot_dimension_numbers<[1], [0], [0], [1], [0, 0, 1, 1], [], []>} : vector<8x128xf32>, vector<128x128xf32>, vector<8x128xf32> -> vector<8x128xf32>
    %177 = arith.addf %171, %176 : vector<8x128xf32>
    %178 = vector.broadcast %21 : vector<1x128xf32> to vector<8x128xf32>
    %179 = arith.addf %177, %178 : vector<8x128xf32>
    %cst_120 = arith.constant dense<0xFF800000> : vector<8xf32>
    %180 = vector.multi_reduction <maximumf>, %179, %cst_120 [1] : vector<8x128xf32> to vector<8xf32>
    %181 = vector.shape_cast %180 : vector<8xf32> to vector<8x1xf32>
    %182 = vector.broadcast %181 : vector<8x1xf32> to vector<8x128xf32>
    %183 = arith.subf %179, %182 : vector<8x128xf32>
    %184 = math.exp %183 : vector<8x128xf32>
    %cst_121 = arith.constant dense<0.000000e+00> : vector<8xf32>
    %185 = vector.multi_reduction <add>, %184, %cst_121 [1] : vector<8x128xf32> to vector<8xf32>
    %186 = vector.shape_cast %185 : vector<8xf32> to vector<8x1xf32>
    %187 = math.log %186 : vector<8x1xf32>
    %188 = vector.broadcast %187 : vector<8x1xf32> to vector<8x128xf32>
    %189 = arith.subf %183, %188 : vector<8x128xf32>
    %c56_122 = arith.constant 56 : index
    %c0_123 = arith.constant 0 : index
    %190 = vector.load %arg9[%c56_122, %c0_123] : memref<64x128xf32, #tpu.memory_space<vmem>>, vector<8x128xf32>
    tpu.vector_store %arg9[%c56_122, %c0_123], %189 {strides = array<i32>} : memref<64x128xf32, #tpu.memory_space<vmem>>, vector<8x128xf32>,
    %c0_124 = arith.constant 0 : index
    %c0_125 = arith.constant 0 : index
    %191 = vector.load %arg11[%c0_124, %c0_125] : memref<8x128xf32, #tpu.memory_space<vmem>>, vector<8x128xf32>
    tpu.vector_store %arg11[%c0_124, %c0_125], %174 {strides = array<i32>} : memref<8x128xf32, #tpu.memory_space<vmem>>, vector<8x128xf32>,
    %c0_126 = arith.constant 0 : index
    %c0_127 = arith.constant 0 : index
    %192 = vector.load %arg10[%c0_126, %c0_127] : memref<8x128xf32, #tpu.memory_space<vmem>>, vector<8x128xf32>
    tpu.vector_store %arg10[%c0_126, %c0_127], %174 {strides = array<i32>} : memref<8x128xf32, #tpu.memory_space<vmem>>, vector<8x128xf32>,
    return
  }
  func.func @transform_0(%arg0: i32) -> (i32, i32) {
    %c0_i32 = arith.constant 0 : i32
    %c0_i32_0 = arith.constant 0 : i32
    return %arg0, %c0_i32 : i32, i32
  }
  func.func @transform_1(%arg0: i32) -> (i32, i32) {
    %c0_i32 = arith.constant 0 : i32
    %c0_i32_0 = arith.constant 0 : i32
    %c0_i32_1 = arith.constant 0 : i32
    return %c0_i32, %c0_i32_0 : i32, i32
  }
  func.func @transform_2(%arg0: i32) -> (i32, i32) {
    %c0_i32 = arith.constant 0 : i32
    %c0_i32_0 = arith.constant 0 : i32
    %c0_i32_1 = arith.constant 0 : i32
    return %c0_i32, %c0_i32_0 : i32, i32
  }
  func.func @transform_3(%arg0: i32) -> (i32, i32) {
    %c0_i32 = arith.constant 0 : i32
    %c0_i32_0 = arith.constant 0 : i32
    %c0_i32_1 = arith.constant 0 : i32
    return %c0_i32, %c0_i32_0 : i32, i32
  }
  func.func @transform_4(%arg0: i32) -> (i32, i32) {
    %c0_i32 = arith.constant 0 : i32
    %c0_i32_0 = arith.constant 0 : i32
    %c0_i32_1 = arith.constant 0 : i32
    return %c0_i32, %c0_i32_0 : i32, i32
  }
  func.func @transform_5(%arg0: i32) -> (i32, i32) {
    %c0_i32 = arith.constant 0 : i32
    %c0_i32_0 = arith.constant 0 : i32
    %c0_i32_1 = arith.constant 0 : i32
    return %c0_i32, %c0_i32_0 : i32, i32
  }
  func.func @transform_6(%arg0: i32) -> (i32, i32) {
    %c0_i32 = arith.constant 0 : i32
    %c0_i32_0 = arith.constant 0 : i32
    %c0_i32_1 = arith.constant 0 : i32
    return %c0_i32, %c0_i32_0 : i32, i32
  }
  func.func @transform_7(%arg0: i32) -> (i32, i32) {
    %c0_i32 = arith.constant 0 : i32
    %c0_i32_0 = arith.constant 0 : i32
    %c0_i32_1 = arith.constant 0 : i32
    return %c0_i32, %c0_i32_0 : i32, i32
  }
  func.func @transform_8(%arg0: i32) -> (i32, i32) {
    %c0_i32 = arith.constant 0 : i32
    %c0_i32_0 = arith.constant 0 : i32
    return %arg0, %c0_i32 : i32, i32
  }
  func.func @transform_9(%arg0: i32) -> (i32, i32) {
    %c0_i32 = arith.constant 0 : i32
    %c0_i32_0 = arith.constant 0 : i32
    %c0_i32_1 = arith.constant 0 : i32
    return %c0_i32, %c0_i32_0 : i32, i32
  }
}

</mosaic_0001>

<bundles_post_ra>
// kernel: tpu_custom_call.1
= control target key start
LH: loop header
LB: loop body
LE: loop exit
PB: predicated region body
PF: predicated region fallthrough
CT: control target
= control target key end

     0   :  { %15 = vsyncpa [#allocation6], 0  ;;  %s3848_s0 = inlined_call_operand.vmem [shape: f32[64,16], index: 0, kind: input, shape index: {}]   ;;  %s3849_s1 = inlined_call_operand.vmem [shape: f32[8,128], index: 1, kind: input, shape index: {}]   ;;  %s3850_s2 = inlined_call_operand.vmem [shape: f32[16,128], index: 2, kind: input, shape index: {}]   ;;  %s3851_s3 = inlined_call_operand.hbm [shape: f32[128,128], index: 3, kind: input, shape index: {}]   ;;  %s3852_s4 = inlined_call_operand.vmem [shape: f32[1,128], index: 4, kind: input, shape index: {}]   ;;  %s3853_s5 = inlined_call_operand.vmem [shape: f32[16,128], index: 5, kind: input, shape index: {}]   ;;  %s3854_s6 = inlined_call_operand.hbm [shape: f32[128,128], index: 6, kind: input, shape index: {}]   ;;  %s3855_s7 = inlined_call_operand.vmem [shape: f32[1,128], index: 7, kind: input, shape index: {}]   ;;  %s3856_s8 = inlined_call_operand.hbm [shape: f32[64,128], index: 8, kind: output, shape index: {0}]   ;;  %s3857_s9 = inlined_call_operand.hbm [shape: f32[8,128], index: 9, kind: output, shape index: {1}]  }
   0x1   :  { %16 = vsyncpa [#allocation9], 0 }
   0x2   :  { %17 = vsyncpa [#allocation7], 0 }
   0x3   :  { %18 = vsyncpa [#allocation12], 0  ;;  %s2918_s30 = smov [#allocation5]  }
   0x4   :  { %s30_s10 = sshll.u32 %s2918_s30, 4  ;;  %s31_s10 = int_to_ptr.vmem [resolvable:$true] %s30_s10 }
   0x5   :  { %s2838_s11 = scalar_lea.vmem %s31_s10, 2048  ;;  %p2843_p1 = scmp.lt.s32.totalorder %s31_s10, %s31_s10 }
   0x6   :  { %p2839_p0 = scmp.ne.s32.totalorder %s31_s10, %s2838_s11  ;;  %p2844_p2 = scmp.lt.s32.totalorder %s2838_s11, %s2838_s11 }
   0x8   :  { %p2845_p3 = por %p2844_p2, %p2843_p1 }
   0xa   :  { %p2846_p4 = pnand %p2845_p3, %p2839_p0 }
   0xc   :  { %2849 = shalt.err (!%p2846_p4)
}
   0xd   :  { %s2919_s12 = smov 128   ;;  %s2920_s13 = smov 8  }
   0xe   :  { %36 = dma.hbm_to_vmem [thread:$0]  %s3851_s3, 2048, %s31_s10, [#allocation6], %s2919_s12, %s2919_s12, %s2920_s13  }
   0xf   :  { %s2921_s16 = smov [#allocation8]  }
  0x10   :  { %s46_s17 = sshll.u32 %s2921_s16, 4  ;;  %s47_s17 = int_to_ptr.vmem [resolvable:$true] %s46_s17 }
  0x11   :  { %s2858_s18 = scalar_lea.vmem %s47_s17, 2048  ;;  %p2863_p6 = scmp.lt.s32.totalorder %s47_s17, %s47_s17 }
  0x12   :  { %p2859_p5 = scmp.ne.s32.totalorder %s47_s17, %s2858_s18  ;;  %p2864_p7 = scmp.lt.s32.totalorder %s2858_s18, %s2858_s18 }
  0x14   :  { %p2865_p8 = por %p2864_p7, %p2863_p6 }
  0x16   :  { %p2866_p9 = pnand %p2865_p8, %p2859_p5 }
  0x18   :  { %2869 = shalt.err (!%p2866_p9)
}
  0x19   :  { %52 = dma.hbm_to_vmem [thread:$0]  %s3854_s6, 2048, %s47_s17, [#allocation9], %s2919_s12, %s2919_s12, %s2920_s13  }
  0x1a   :  { %2910 = dma.done.wait [#allocation6], 2048  }
  0x1b   :  { %2911 = vsyncadd [#allocation6], 4294965248 }
  0x1c   :  { %2912 = dma.done.wait [#allocation9], 2048  }
  0x1d   :  { %2913 = vsyncadd [#allocation9], 4294965248  ;;  %vm84_vm0 = vcmask 130048   ;;  %v76_v0 = vld [vmem:[%s3850_s2 + $0x8] sm:$0xff]  ;;  %v75_v1 = vld [vmem:[%s3850_s2] sm:$0xff]  ;;  %v2922_v6 = vmov 0.0  }
  0x1e   :  { %v67_v2 = vld [vmem:[%s3848_s0] sm:$0xff]  ;;  %2197 = vmatprep.subr.mxu0 %v76_v0  ;;  %v68_v3 = vld [vmem:[%s3848_s0 + $0x8] sm:$0xff]  ;;  %v3003_v4 = vld [vmem:[#allocation5 + $0x78] sm:$0xff]  ;;  %vm2923_vm1 = vmmov 0  }
  0x1f   :  { %2201 = vmatprep.mubr.msk.f32.mxu0 %vm84_vm0, %v67_v2  ;;  %2198 = vmatpush3.msra.mxu0 %v76_v0  ;;  %v3008_v5 = vld [vmem:[%s3848_s0 + $0x10] sm:$0xff]  ;;  %v3020_v8 = vld [vmem:[%s3848_s0 + $0x18] sm:$0xff]  ;;  %v3023_v9 = vld [vmem:[#allocation5 + $0x68] sm:$0xff] }
  0x20   :  { %2217 = vmatprep.mubr.msk.f32.mxu1 %vm84_vm0, %v67_v2  ;;  %2199 = vmatprep.subr.mxu0 %v75_v1  ;;  %v3012_v7 = vld [vmem:[#allocation5 + $0x70] sm:$0xff]  ;;  %v3028_v10 = vld [vmem:[%s3848_s0 + $0x20] sm:$0xff]  ;;  %v223_v12 = vld [vmem:[%s3853_s5 + $0x8] sm:$0xff] }
  0x21   :  { %2200 = vmatpush3.msra.mxu0 %v75_v1  ;;  %v3032_v11 = vld [vmem:[#allocation5 + $0x60] sm:$0xff]  ;;  %v3045_v13 = vld [vmem:[%s3848_s0 + $0x28] sm:$0xff]  ;;  %v3048_v14 = vld [vmem:[#allocation5 + $0x58] sm:$0xff]  ;;  %2213 = vmatprep.subr.mxu1 %v223_v12 }
  0x22   :  { %2202 = vmatmul.mubr.msk.f32.vlgmr.msra.gmra.mxu0 %vm84_vm0, %v68_v3  ;;  %2229 = vmatprep.subr.mxu0 %v2922_v6  ;;  %v3053_v15 = vld [vmem:[%s3848_s0 + $0x30] sm:$0xff]  ;;  %v222_v16 = vld [vmem:[%s3853_s5] sm:$0xff]  ;;  %v3070_v18 = vld [vmem:[%s3848_s0 + $0x38] sm:$0xff] }
  0x23   :  { %2230 = vmatpush3.msra.mxu0 %v3003_v4  ;;  %2204 = vmatprep.mubr.msk.f32.mxu0 %vm84_vm0, %v3008_v5  ;;  %v3060_v17 = vld [vmem:[#allocation5 + $0x50] sm:$0xff]  ;;  %v3073_v19 = vld [vmem:[#allocation5 + $0x48] sm:$0xff]  ;;  %v3077_v20 = vld [vmem:[#allocation5 + $0x40] sm:$0xff] }
  0x24   :  { %2231 = vmatprep.subr.mxu0 %v2922_v6  ;;  %2214 = vmatpush3.msra.mxu1 %v223_v12  ;;  %v3084_v21 = vld [vmem:[#allocation8 + $0x78] sm:$0xff]  ;;  %v3092_v23 = vld [vmem:[#allocation8 + $0x70] sm:$0xff]  ;;  %v3100_v25 = vld [vmem:[#allocation8 + $0x68] sm:$0xff] }
  0x25   :  { %2232 = vmatpush3.msra.mxu0 %v3012_v7  ;;  %2215 = vmatprep.subr.mxu1 %v222_v16  ;;  %v3087_v22 = vld [vmem:[#allocation5 + $0x38] sm:$0xff]  ;;  %v3095_v24 = vld [vmem:[#allocation5 + $0x30] sm:$0xff]  ;;  %v3103_v26 = vld [vmem:[#allocation5 + $0x28] sm:$0xff] }
  0x26   :  { %2233 = vmatprep.subr.mxu0 %v2922_v6  ;;  %2205 = vmatmul.mubr.msk.f32.gmra.mxu0 %vm84_vm0, %v3020_v8  ;;  %v3108_v27 = vld [vmem:[#allocation8 + $0x60] sm:$0xff]  ;;  %v3116_v29 = vld [vmem:[#allocation8 + $0x58] sm:$0xff]  ;;  %v3124_v31 = vld [vmem:[#allocation8 + $0x50] sm:$0xff] }
  0x27   :  { %2234 = vmatpush3.msra.mxu0 %v3023_v9  ;;  %2207 = vmatprep.mubr.msk.f32.mxu0 %vm84_vm0, %v3028_v10  ;;  %v3111_v28 = vld [vmem:[#allocation5 + $0x20] sm:$0xff]  ;;  %v3119_v30 = vld [vmem:[#allocation5 + $0x18] sm:$0xff]  ;;  %v3127_v32 = vld [vmem:[#allocation5 + $0x10] sm:$0xff] }
  0x28   :  { %2235 = vmatprep.subr.mxu0 %v2922_v6  ;;  %2216 = vmatpush3.msra.mxu1 %v222_v16  ;;  %v3132_v33 = vld [vmem:[#allocation8 + $0x48] sm:$0xff]  ;;  %v3140_v35 = vld [vmem:[#allocation8 + $0x40] sm:$0xff]  ;;  %v3153_v38 = vld [vmem:[#allocation8 + $0x38] sm:$0xff] }
  0x29   :  { %2236 = vmatpush3.msra.mxu0 %v3032_v11  ;;  %2264 = vmatprep.subr.mxu1 %v2922_v6  ;;  %v3135_v34 = vld [vmem:[#allocation5 + $0x8] sm:$0xff]  ;;  %v3143_v36 = vld [vmem:[#allocation5] sm:$0xff]  ;;  %v3159_v39 = vld [vmem:[#allocation8 + $0x30] sm:$0xff] }
  0x2a   :  { %2237 = vmatprep.subr.mxu0 %v2922_v6  ;;  %2208 = vmatmul.mubr.msk.f32.gmra.mxu0 %vm84_vm0, %v3045_v13  ;;  %v3150_v37 = vld [vmem:[%s3849_s1] sm:$0xff]  ;;  %v3166_v40 = vld [vmem:[#allocation8 + $0x28] sm:$0xff]  ;;  %v3179_v42 = vld [vmem:[#allocation8 + $0x18] sm:$0xff] }
  0x2b   :  { %2238 = vmatpush3.msra.mxu0 %v3048_v14  ;;  %2210 = vmatprep.mubr.msk.f32.mxu0 %vm84_vm0, %v3053_v15  ;;  %v3173_v41 = vld [vmem:[#allocation8 + $0x20] sm:$0xff]  ;;  %v3187_v43 = vld [vmem:[#allocation8 + $0x10] sm:$0xff]  ;;  %v3222_v44 = vld [vmem:[#allocation8 + $0x8] sm:$0xff] }
  0x2c   :  { %2239 = vmatprep.subr.mxu0 %v2922_v6  ;;  %2218 = vmatmul.mubr.msk.f32.vlgmr.msra.gmra.mxu1 %vm84_vm0, %v68_v3  ;;  %v3228_v45 = vld [vmem:[#allocation8] sm:$0xff] }
  0x2d   :  { %2240 = vmatpush3.msra.mxu0 %v3060_v17  ;;  %2265 = vmatpush3.msra.mxu1 %v3084_v21  ;;  %v1887_v46 = vld [vmem:[%s3852_s4] ss:$0 sm:$0xff] }
  0x2e   :  { %2241 = vmatprep.subr.mxu0 %v2922_v6  ;;  %2211 = vmatmul.mubr.msk.f32.gmra.mxu0 %vm84_vm0, %v3070_v18  ;;  %v3294_v63 = vld [vmem:[%s3855_s7] ss:$0 sm:$0xff]  ;;  %s2925_s7 = smov [#allocation11]  }
  0x2f   :  { %2242 = vmatpush3.msra.mxu0 %v3073_v19  ;;  %2261 = vmatprep.mubr.msk.f32.mxu0 %vm2923_vm1, %v2922_v6  ;;  %s1873_s24 = sshll.u32 %s2925_s7, 4  ;;  %s1874_s24 = int_to_ptr.vmem [resolvable:$true] %s1873_s24 }
  0x30   :  { %2243 = vmatprep.subr.mxu0 %v2922_v6  ;;  %2266 = vmatprep.subr.mxu1 %v2922_v6  ;;  %s2870_s25 = scalar_lea.vmem %s1874_s24, 128  ;;  %p2875_p11 = scmp.lt.s32.totalorder %s1874_s24, %s1874_s24 }
  0x31   :  { %2244 = vmatpush3.msra.mxu0 %v3077_v20  ;;  %2267 = vmatpush3.msra.mxu1 %v3092_v23  ;;  %p2871_p10 = scmp.ne.s32.totalorder %s1874_s24, %s2870_s25  ;;  %p2876_p12 = scmp.lt.s32.totalorder %s2870_s25, %s2870_s25 }
  0x32   :  { %2245 = vmatprep.subr.mxu0 %v2922_v6  ;;  %2268 = vmatprep.subr.mxu1 %v2922_v6 }
  0x33   :  { %2246 = vmatpush3.msra.mxu0 %v3087_v22  ;;  %2269 = vmatpush3.msra.mxu1 %v3100_v25  ;;  %p2877_p13 = por %p2876_p12, %p2875_p11 }
  0x34   :  { %2247 = vmatprep.subr.mxu0 %v2922_v6  ;;  %2270 = vmatprep.subr.mxu1 %v2922_v6 }
  0x35   :  { %2248 = vmatpush3.msra.mxu0 %v3095_v24  ;;  %2271 = vmatpush3.msra.mxu1 %v3108_v27  ;;  %p2878_p0 = pnand %p2877_p13, %p2871_p10 }
  0x36   :  { %2249 = vmatprep.subr.mxu0 %v2922_v6  ;;  %2272 = vmatprep.subr.mxu1 %v2922_v6 }
  0x37   :  { %2250 = vmatpush3.msra.mxu0 %v3103_v26  ;;  %2273 = vmatpush3.msra.mxu1 %v3116_v29 }
  0x38   :  { %2251 = vmatprep.subr.mxu0 %v2922_v6  ;;  %2274 = vmatprep.subr.mxu1 %v2922_v6 }
  0x39   :  { %2252 = vmatpush3.msra.mxu0 %v3111_v28  ;;  %2275 = vmatpush3.msra.mxu1 %v3124_v31 }
  0x3a   :  { %2253 = vmatprep.subr.mxu0 %v2922_v6  ;;  %2276 = vmatprep.subr.mxu1 %v2922_v6 }
  0x3b   :  { %2254 = vmatpush3.msra.mxu0 %v3119_v30  ;;  %2277 = vmatpush3.msra.mxu1 %v3132_v33 }
  0x3c   :  { %2255 = vmatprep.subr.mxu0 %v2922_v6  ;;  %2278 = vmatprep.subr.mxu1 %v2922_v6 }
  0x3d   :  { %2256 = vmatpush3.msra.mxu0 %v3127_v32  ;;  %2279 = vmatpush3.msra.mxu1 %v3140_v35 }
  0x3e   :  { %2257 = vmatprep.subr.mxu0 %v2922_v6  ;;  %2280 = vmatprep.subr.mxu1 %v2922_v6 }
  0x3f   :  { %2258 = vmatpush3.msra.mxu0 %v3135_v34  ;;  %2281 = vmatpush3.msra.mxu1 %v3153_v38 }
  0x40   :  { %2259 = vmatprep.subr.mxu0 %v2922_v6  ;;  %2282 = vmatprep.subr.mxu1 %v2922_v6 }
  0x41   :  { %2260 = vmatpush3.msra.mxu0 %v3143_v36  ;;  %2220 = vmatprep.mubr.msk.f32.mxu1 %vm84_vm0, %v3008_v5 }
  0x42   :  { %2262 = vmatmul.mubr.f32.vlgmr.msra.gmra.mxu0 %v3150_v37  ;;  %2283 = vmatpush3.msra.mxu1 %v3159_v39 }
  0x43   :  { %2299 = vmatprep.subr.mxu0 %v2922_v6  ;;  %2284 = vmatprep.subr.mxu1 %v2922_v6 }
  0x44   :  { %2221 = vmatmul.mubr.msk.f32.gmra.mxu1 %vm84_vm0, %v3020_v8  ;;  %2300 = vmatpush3.msra.mxu0 %v3003_v4 }
  0x45   :  { %2285 = vmatpush3.msra.mxu1 %v3166_v40  ;;  %2223 = vmatprep.mubr.msk.f32.mxu1 %vm84_vm0, %v3028_v10 }
  0x46   :  { %2286 = vmatprep.subr.mxu1 %v2922_v6  ;;  %2301 = vmatprep.subr.mxu0 %v2922_v6 }
  0x47   :  { %2287 = vmatpush3.msra.mxu1 %v3173_v41  ;;  %2302 = vmatpush3.msra.mxu0 %v3012_v7 }
  0x48   :  { %2288 = vmatprep.subr.mxu1 %v2922_v6  ;;  %2224 = vmatmul.mubr.msk.f32.gmra.mxu1 %vm84_vm0, %v3045_v13 }
  0x49   :  { %2289 = vmatpush3.msra.mxu1 %v3179_v42  ;;  %2226 = vmatprep.mubr.msk.f32.mxu1 %vm84_vm0, %v3053_v15 }
  0x4a   :  { %2290 = vmatprep.subr.mxu1 %v2922_v6  ;;  %2303 = vmatprep.subr.mxu0 %v2922_v6 }
  0x4b   :  { %2291 = vmatpush3.msra.mxu1 %v3187_v43  ;;  %2304 = vmatpush3.msra.mxu0 %v3023_v9 }
  0x4c   :  { %2292 = vmatprep.subr.mxu1 %v2922_v6  ;;  %2227 = vmatmul.mubr.msk.f32.gmra.mxu1 %vm84_vm0, %v3070_v18 }
  0x4d   :  { %2296 = vmatprep.mubr.msk.f32.mxu1 %vm2923_vm1, %v2922_v6  ;;  %2305 = vmatprep.subr.mxu0 %v2922_v6 }
  0x4e   :  { %2331 = vmatprep.mubr.msk.f32.mxu0 %vm2923_vm1, %v2922_v6  ;;  %2306 = vmatpush3.msra.mxu0 %v3032_v11 }
  0x4f   :  { %2307 = vmatprep.subr.mxu0 %v2922_v6  ;;  %2293 = vmatpush3.msra.mxu1 %v3222_v44 }
  0x50   :  { %2308 = vmatpush3.msra.mxu0 %v3048_v14  ;;  %2294 = vmatprep.subr.mxu1 %v2922_v6 }
  0x51   :  { %2309 = vmatprep.subr.mxu0 %v2922_v6  ;;  %2295 = vmatpush3.msra.mxu1 %v3228_v45 }
  0x52   :  { %2310 = vmatpush3.msra.mxu0 %v3060_v17  ;;  %2334 = vmatprep.subr.mxu1 %v2922_v6 }
  0x53   :  { %2311 = vmatprep.subr.mxu0 %v2922_v6  ;;  %2297 = vmatmul.mubr.f32.vlgmr.msra.gmra.mxu1 %v3150_v37 }
  0x54   :  { %2312 = vmatpush3.msra.mxu0 %v3073_v19  ;;  %2335 = vmatpush3.msra.mxu1 %v3084_v21 }
  0x55   :  { %2313 = vmatprep.subr.mxu0 %v2922_v6  ;;  %2336 = vmatprep.subr.mxu1 %v2922_v6 }
  0x56   :  { %2314 = vmatpush3.msra.mxu0 %v3077_v20  ;;  %2337 = vmatpush3.msra.mxu1 %v3092_v23 }
  0x57   :  { %2315 = vmatprep.subr.mxu0 %v2922_v6  ;;  %2338 = vmatprep.subr.mxu1 %v2922_v6 }
  0x58   :  { %2316 = vmatpush3.msra.mxu0 %v3087_v22  ;;  %2339 = vmatpush3.msra.mxu1 %v3100_v25 }
  0x59   :  { %2317 = vmatprep.subr.mxu0 %v2922_v6  ;;  %2366 = vmatprep.mubr.msk.f32.mxu1 %vm2923_vm1, %v2922_v6 }
  0x5a   :  { %2318 = vmatpush3.msra.mxu0 %v3095_v24  ;;  %2340 = vmatprep.subr.mxu1 %v2922_v6 }
  0x5b   :  { %2319 = vmatprep.subr.mxu0 %v2922_v6  ;;  %2341 = vmatpush3.msra.mxu1 %v3108_v27 }
  0x5c   :  { %2320 = vmatpush3.msra.mxu0 %v3103_v26  ;;  %2342 = vmatprep.subr.mxu1 %v2922_v6 }
  0x5d   :  { %2321 = vmatprep.subr.mxu0 %v2922_v6  ;;  %2343 = vmatpush3.msra.mxu1 %v3116_v29 }
  0x5e   :  { %2322 = vmatpush3.msra.mxu0 %v3111_v28  ;;  %2344 = vmatprep.subr.mxu1 %v2922_v6 }
  0x5f   :  { %2323 = vmatprep.subr.mxu0 %v2922_v6  ;;  %2345 = vmatpush3.msra.mxu1 %v3124_v31 }
  0x60   :  { %2324 = vmatpush3.msra.mxu0 %v3119_v30  ;;  %2346 = vmatprep.subr.mxu1 %v2922_v6 }
  0x61   :  { %2325 = vmatprep.subr.mxu0 %v2922_v6  ;;  %2347 = vmatpush3.msra.mxu1 %v3132_v33 }
  0x62   :  { %2326 = vmatpush3.msra.mxu0 %v3127_v32  ;;  %2348 = vmatprep.subr.mxu1 %v2922_v6 }
  0x63   :  { %2327 = vmatprep.subr.mxu0 %v2922_v6  ;;  %2349 = vmatpush3.msra.mxu1 %v3140_v35 }
  0x64   :  { %2328 = vmatpush3.msra.mxu0 %v3135_v34  ;;  %2350 = vmatprep.subr.mxu1 %v2922_v6 }
  0x65   :  { %2329 = vmatprep.subr.mxu0 %v2922_v6  ;;  %2351 = vmatpush3.msra.mxu1 %v3153_v38 }
  0x66   :  { %2330 = vmatpush3.msra.mxu0 %v3143_v36  ;;  %2352 = vmatprep.subr.mxu1 %v2922_v6 }
  0x67   :  { %2369 = vmatprep.subr.mxu0 %v2922_v6  ;;  %2353 = vmatpush3.msra.mxu1 %v3159_v39 }
  0x68   :  { %2354 = vmatprep.subr.mxu1 %v2922_v6 }
  0x69   :  { %2355 = vmatpush3.msra.mxu1 %v3166_v40 }
  0x6a   :  { %2356 = vmatprep.subr.mxu1 %v2922_v6 }
  0x6b   :  { %2357 = vmatpush3.msra.mxu1 %v3173_v41 }
  0x6c   :  { %2358 = vmatprep.subr.mxu1 %v2922_v6 }
  0x6d   :  { %2359 = vmatpush3.msra.mxu1 %v3179_v42 }
  0x6e   :  { %2360 = vmatprep.subr.mxu1 %v2922_v6 }
  0x6f   :  { %2361 = vmatpush3.msra.mxu1 %v3187_v43 }
  0x70   :  { %2362 = vmatprep.subr.mxu1 %v2922_v6 }
  0x71   :  { %2363 = vmatpush3.msra.mxu1 %v3222_v44 }
  0x72   :  { %2364 = vmatprep.subr.mxu1 %v2922_v6 }
  0x73   :  { %2365 = vmatpush3.msra.mxu1 %v3228_v45 }
  0x74   :  { %2404 = vmatprep.subr.mxu1 %v2922_v6 }
  0xe2   :  { %v2203_v47 = vpop.f32.mrf.mxu0 }
  0xe3   :  { %v3277_v48 = vadd.f32 %v2203_v47, %v1887_v46 }
  0xe4   :  { %v175_v49 = vpop.f32.mrf.mxu0 }
  0xe5   :  { %v176_v1 = vadd.f32 %v1887_v46, %v175_v49 }
  0xe6   :  { %v2206_v50 = vpop.f32.mrf.mxu0 }
  0xe7   :  { %v3279_v51 = vadd.f32 %v2206_v50, %v1887_v46 }
  0xe8   :  { %v185_v52 = vpop.f32.mrf.mxu0 }
  0xe9   :  { %v3281_v53 = vadd.f32 %v1887_v46, %v185_v52 }
  0xea   :  { %v2209_v54 = vpop.f32.mrf.mxu0 }
  0xeb   :  { %v3283_v55 = vadd.f32 %v2209_v54, %v1887_v46 }
  0xec   :  { %v195_v56 = vpop.f32.mrf.mxu0  ;;  %v2219_v62 = vpop.f32.mrf.mxu1 }
  0xed   :  { %v3285_v57 = vadd.f32 %v1887_v46, %v195_v56  ;;  %v3297_v0 = vadd.f32 %v2219_v62, %v3294_v63 }
  0xee   :  { %v2212_v58 = vpop.f32.mrf.mxu0  ;;  %v3299_v2 = vpop.f32.mrf.mxu1 }
  0xef   :  { %v3287_v59 = vadd.f32 %v2212_v58, %v1887_v46  ;;  %v298_v58 = vadd.f32 %v3294_v63, %v3299_v2 }
  0xf0   :  { %v205_v60 = vpop.f32.mrf.mxu0 }
  0xf1   :  { %v3289_v61 = vadd.f32 %v1887_v46, %v205_v60  ;;  %v344_v60 = vlaneseq }
 0x102   :  { %v433_v3 = vpop.f32.mrf.mxu0 }
 0x103   :  { %v437_v5 = vadd.f32 %v433_v3, %v176_v1  ;;  %v345_v1 = vand.u32 127, %v344_v60  ;;  %v2924_v3 = vmov -1e+30   ;;  %v3653_v60 = vld [vmem:[#allocation8 + $0x18] sm:$0xff] }
 0x104   :  { %v2263_v8 = vpop.f32.mrf.mxu0  ;;  %v2222_v10 = vpop.f32.mrf.mxu1 }
 0x105   :  { %2332 = vmatmul.mubr.f32.vlgmr.msra.gmra.mxu0 %v437_v5  ;;  %2367 = vmatmul.mubr.f32.vlgmr.msra.gmra.mxu1 %v437_v5  ;;  %v3304_v12 = vadd.f32 %v2222_v10, %v3294_v63  ;;  %vm346_vm2 = vcmp.lt.s32.totalorder %v345_v1, 8  ;;  %v3673_v1 = vld [vmem:[#allocation8 + $0x8] sm:$0xff] }
 0x106   :  { %2370 = vmatpush3.msra.mxu0 %v3003_v4  ;;  %2405 = vmatpush3.msra.mxu1 %v3084_v21  ;;  %v307_v13 = vpop.f32.mrf.mxu1  ;;  %v3389_v5 = vsel %vm346_vm2, 0.0, %v2924_v3  ;;  %v3677_v3 = vld [vmem:[#allocation8] sm:$0xff] }
 0x107   :  { %2371 = vmatprep.subr.mxu0 %v2922_v6  ;;  %2406 = vmatprep.subr.mxu1 %v2922_v6  ;;  %v3311_v15 = vadd.f32 %v3294_v63, %v307_v13 }
 0x108   :  { %2372 = vmatpush3.msra.mxu0 %v3012_v7  ;;  %2407 = vmatpush3.msra.mxu1 %v3092_v23  ;;  %v2225_v16 = vpop.f32.mrf.mxu1 }
 0x109   :  { %2373 = vmatprep.subr.mxu0 %v2922_v6  ;;  %2408 = vmatprep.subr.mxu1 %v2922_v6  ;;  %v3318_v18 = vadd.f32 %v2225_v16, %v3294_v63 }
 0x10a   :  { %2374 = vmatpush3.msra.mxu0 %v3023_v9  ;;  %2409 = vmatpush3.msra.mxu1 %v3100_v25  ;;  %v317_v37 = vpop.f32.mrf.mxu1 }
 0x10b   :  { %2375 = vmatprep.subr.mxu0 %v2922_v6  ;;  %2410 = vmatprep.subr.mxu1 %v2922_v6  ;;  %v3325_v46 = vadd.f32 %v3294_v63, %v317_v37 }
 0x10c   :  { %2376 = vmatpush3.msra.mxu0 %v3032_v11  ;;  %2411 = vmatpush3.msra.mxu1 %v3108_v27  ;;  %v2228_v47 = vpop.f32.mrf.mxu1 }
 0x10d   :  { %2377 = vmatprep.subr.mxu0 %v2922_v6  ;;  %2412 = vmatprep.subr.mxu1 %v2922_v6  ;;  %v3332_v49 = vadd.f32 %v2228_v47, %v3294_v63 }
 0x10e   :  { %2378 = vmatpush3.msra.mxu0 %v3048_v14  ;;  %2413 = vmatpush3.msra.mxu1 %v3116_v29  ;;  %v327_v50 = vpop.f32.mrf.mxu1 }
 0x10f   :  { %2379 = vmatprep.subr.mxu0 %v2922_v6  ;;  %2414 = vmatprep.subr.mxu1 %v2922_v6  ;;  %v3339_v52 = vadd.f32 %v3294_v63, %v327_v50  ;;  %v3629_v50 = vld [vmem:[#allocation8 + $0x38] sm:$0xff] }
 0x110   :  { %2380 = vmatpush3.msra.mxu0 %v3060_v17  ;;  %2415 = vmatpush3.msra.mxu1 %v3124_v31 }
 0x111   :  { %2381 = vmatprep.subr.mxu0 %v2922_v6  ;;  %2416 = vmatprep.subr.mxu1 %v2922_v6 }
 0x112   :  { %2382 = vmatpush3.msra.mxu0 %v3073_v19  ;;  %2417 = vmatpush3.msra.mxu1 %v3132_v33 }
 0x113   :  { %2383 = vmatprep.subr.mxu0 %v2922_v6  ;;  %2418 = vmatprep.subr.mxu1 %v2922_v6  ;;  %v520_v54 = vpop.f32.mrf.mxu1 }
 0x114   :  { %2384 = vmatpush3.msra.mxu0 %v3077_v20  ;;  %2419 = vmatpush3.msra.mxu1 %v3140_v35  ;;  %v524_v62 = vadd.f32 %v520_v54, %v298_v58  ;;  %v3635_v54 = vld [vmem:[#allocation8 + $0x30] sm:$0xff]  ;;  %v3647_v58 = vld [vmem:[#allocation8 + $0x20] sm:$0xff] }
 0x115   :  { %2385 = vmatprep.subr.mxu0 %v2922_v6  ;;  %2420 = vmatprep.subr.mxu1 %v2922_v6  ;;  %v2298_v56 = vpop.f32.mrf.mxu1 }
 0x116   :  { %2386 = vmatpush3.msra.mxu0 %v3087_v22  ;;  %2421 = vmatpush3.msra.mxu1 %v3153_v38  ;;  %v3392_v8 = vadd.f32 %v524_v62, %v3389_v5  ;;  %v3641_v56 = vld [vmem:[#allocation8 + $0x28] sm:$0xff]  ;;  %v3659_v62 = vld [vmem:[#allocation8 + $0x10] sm:$0xff] }
 0x117   :  { %2387 = vmatprep.subr.mxu0 %v2922_v6  ;;  %2422 = vmatprep.subr.mxu1 %v2922_v6 }
 0x118   :  { %2388 = vmatpush3.msra.mxu0 %v3095_v24  ;;  %2423 = vmatpush3.msra.mxu1 %v3159_v39 }
 0x119   :  { %2389 = vmatprep.subr.mxu0 %v2922_v6  ;;  %2424 = vmatprep.subr.mxu1 %v2922_v6 }
 0x11a   :  { %2390 = vmatpush3.msra.mxu0 %v3103_v26  ;;  %2425 = vmatpush3.msra.mxu1 %v3166_v40 }
 0x11b   :  { %2391 = vmatprep.subr.mxu0 %v2922_v6  ;;  %2426 = vmatprep.subr.mxu1 %v2922_v6 }
 0x11c   :  { %2392 = vmatpush3.msra.mxu0 %v3111_v28  ;;  %2427 = vmatpush3.msra.mxu1 %v3173_v41 }
 0x11d   :  { %2393 = vmatprep.subr.mxu0 %v2922_v6  ;;  %2428 = vmatprep.subr.mxu1 %v2922_v6 }
 0x11e   :  { %2394 = vmatpush3.msra.mxu0 %v3119_v30  ;;  %2429 = vmatpush3.msra.mxu1 %v3179_v42 }
 0x11f   :  { %2395 = vmatprep.subr.mxu0 %v2922_v6  ;;  %2430 = vmatprep.subr.mxu1 %v2922_v6 }
 0x120   :  { %2396 = vmatpush3.msra.mxu0 %v3127_v32  ;;  %2431 = vmatpush3.msra.mxu1 %v3187_v43 }
 0x121   :  { %2397 = vmatprep.subr.mxu0 %v2922_v6  ;;  %2432 = vmatprep.subr.mxu1 %v2922_v6 }
 0x122   :  { %2398 = vmatpush3.msra.mxu0 %v3135_v34  ;;  %2433 = vmatpush3.msra.mxu1 %v3222_v44 }
 0x123   :  { %2399 = vmatprep.subr.mxu0 %v2922_v6  ;;  %2434 = vmatprep.subr.mxu1 %v2922_v6 }
 0x124   :  { %2400 = vmatpush3.msra.mxu0 %v3143_v36  ;;  %2401 = vmatprep.mubr.msk.f32.mxu0 %vm2923_vm1, %v2922_v6 }
 0x125   :  { %2435 = vmatpush3.msra.mxu1 %v3228_v45  ;;  %2436 = vmatprep.mubr.msk.f32.mxu1 %vm2923_vm1, %v2922_v6 }
 0x126   :  { %2439 = vmatprep.subr.mxu0 %v2922_v6  ;;  %2474 = vmatprep.subr.mxu1 %v2922_v6 }
 0x127   :  { %526 = vmax.xlane.f32.xlu0 %v3392_v8 }
 0x1c5   :  { %v621_v10 = vpop.f32.mrf.mxu0  ;;  %v708_v13 = vpop.f32.mrf.mxu1 }
 0x1c6   :  { %v625_v16 = vadd.f32 %v621_v10, %v3277_v48  ;;  %v712_v37 = vadd.f32 %v708_v13, %v3297_v0  ;;  %v3593_v48 = vld [vmem:[#allocation8 + $0x68] sm:$0xff]  ;;  %v3611_v0 = vld [vmem:[#allocation8 + $0x50] sm:$0xff] }
 0x1c7   :  { %v2333_v47 = vpop.f32.mrf.mxu0  ;;  %v2368_v63 = vpop.f32.mrf.mxu1 }
 0x1c8   :  { %2402 = vmatmul.mubr.f32.vlgmr.msra.gmra.mxu0 %v625_v16  ;;  %2437 = vmatmul.mubr.f32.vlgmr.msra.gmra.mxu1 %v625_v16  ;;  %v3398_v2 = vadd.f32 %v712_v37, %v3389_v5 }
 0x1c9   :  { %2440 = vmatpush3.msra.mxu0 %v3003_v4  ;;  %2475 = vmatpush3.msra.mxu1 %v3084_v21 }
 0x1ca   :  { %714 = vmax.xlane.f32.xlu0 %v3398_v2  ;;  %2441 = vmatprep.subr.mxu0 %v2922_v6 }
 0x1cb   :  { %2476 = vmatprep.subr.mxu1 %v2922_v6  ;;  %2442 = vmatpush3.msra.mxu0 %v3012_v7 }
 0x1cc   :  { %2477 = vmatpush3.msra.mxu1 %v3092_v23  ;;  %2443 = vmatprep.subr.mxu0 %v2922_v6 }
 0x1cd   :  { %2478 = vmatprep.subr.mxu1 %v2922_v6  ;;  %2444 = vmatpush3.msra.mxu0 %v3023_v9 }
 0x1ce   :  { %2479 = vmatpush3.msra.mxu1 %v3100_v25  ;;  %2445 = vmatprep.subr.mxu0 %v2922_v6 }
 0x1cf   :  { %2480 = vmatprep.subr.mxu1 %v2922_v6  ;;  %2446 = vmatpush3.msra.mxu0 %v3032_v11 }
 0x1d0   :  { %2481 = vmatpush3.msra.mxu1 %v3108_v27  ;;  %2447 = vmatprep.subr.mxu0 %v2922_v6 }
 0x1d1   :  { %2482 = vmatprep.subr.mxu1 %v2922_v6  ;;  %2448 = vmatpush3.msra.mxu0 %v3048_v14 }
 0x1d2   :  { %2483 = vmatpush3.msra.mxu1 %v3116_v29  ;;  %2449 = vmatprep.subr.mxu0 %v2922_v6 }
 0x1d3   :  { %2484 = vmatprep.subr.mxu1 %v2922_v6  ;;  %2450 = vmatpush3.msra.mxu0 %v3060_v17 }
 0x1d4   :  { %2485 = vmatpush3.msra.mxu1 %v3124_v31  ;;  %2451 = vmatprep.subr.mxu0 %v2922_v6 }
 0x1d5   :  { %2486 = vmatprep.subr.mxu1 %v2922_v6  ;;  %2452 = vmatpush3.msra.mxu0 %v3073_v19 }
 0x1d6   :  { %2487 = vmatpush3.msra.mxu1 %v3132_v33  ;;  %2453 = vmatprep.subr.mxu0 %v2922_v6 }
 0x1d7   :  { %2488 = vmatprep.subr.mxu1 %v2922_v6  ;;  %2454 = vmatpush3.msra.mxu0 %v3077_v20 }
 0x1d8   :  { %2489 = vmatpush3.msra.mxu1 %v3140_v35  ;;  %2455 = vmatprep.subr.mxu0 %v2922_v6 }
 0x1d9   :  { %2490 = vmatprep.subr.mxu1 %v2922_v6  ;;  %2456 = vmatpush3.msra.mxu0 %v3087_v22 }
 0x1da   :  { %2491 = vmatpush3.msra.mxu1 %v3153_v38  ;;  %2457 = vmatprep.subr.mxu0 %v2922_v6 }
 0x1db   :  { %2492 = vmatprep.subr.mxu1 %v2922_v6  ;;  %2458 = vmatpush3.msra.mxu0 %v3095_v24 }
 0x1dc   :  { %2493 = vmatpush3.msra.mxu1 %v3159_v39  ;;  %2459 = vmatprep.subr.mxu0 %v2922_v6 }
 0x1dd   :  { %2494 = vmatprep.subr.mxu1 %v2922_v6  ;;  %2460 = vmatpush3.msra.mxu0 %v3103_v26  ;;  %v3531_v26 = vld [vmem:[#allocation5 + $0x30] sm:$0xff] }
 0x1de   :  { %2495 = vmatpush3.msra.mxu1 %v3166_v40  ;;  %2461 = vmatprep.subr.mxu0 %v2922_v6 }
 0x1df   :  { %2496 = vmatprep.subr.mxu1 %v2922_v6  ;;  %2462 = vmatpush3.msra.mxu0 %v3111_v28  ;;  %v3543_v28 = vld [vmem:[#allocation5 + $0x20] sm:$0xff] }
 0x1e0   :  { %2497 = vmatpush3.msra.mxu1 %v3173_v41  ;;  %2463 = vmatprep.subr.mxu0 %v2922_v6 }
 0x1e1   :  { %2498 = vmatprep.subr.mxu1 %v2922_v6  ;;  %2464 = vmatpush3.msra.mxu0 %v3119_v30  ;;  %v3555_v30 = vld [vmem:[#allocation5 + $0x10] sm:$0xff] }
 0x1e2   :  { %2499 = vmatpush3.msra.mxu1 %v3179_v42  ;;  %2465 = vmatprep.subr.mxu0 %v2922_v6 }
 0x1e3   :  { %2500 = vmatprep.subr.mxu1 %v2922_v6  ;;  %2466 = vmatpush3.msra.mxu0 %v3127_v32  ;;  %v3565_v32 = vld [vmem:[#allocation5] sm:$0xff] }
 0x1e4   :  { %2501 = vmatpush3.msra.mxu1 %v3187_v43  ;;  %2467 = vmatprep.subr.mxu0 %v2922_v6 }
 0x1e5   :  { %2502 = vmatprep.subr.mxu1 %v2922_v6  ;;  %2468 = vmatpush3.msra.mxu0 %v3135_v34 }
 0x1e6   :  { %2503 = vmatpush3.msra.mxu1 %v3222_v44  ;;  %2469 = vmatprep.subr.mxu0 %v2922_v6 }
 0x1e7   :  { %2504 = vmatprep.subr.mxu1 %v2922_v6  ;;  %2470 = vmatpush3.msra.mxu0 %v3143_v36 }
 0x1e8   :  { %2471 = vmatprep.mubr.msk.f32.mxu0 %vm2923_vm1, %v2922_v6  ;;  %2505 = vmatpush3.msra.mxu1 %v3228_v45 }
 0x1e9   :  { %2506 = vmatprep.mubr.msk.f32.mxu1 %vm2923_vm1, %v2922_v6  ;;  %2509 = vmatprep.subr.mxu0 %v2922_v6 }
 0x1ea   :  { %2544 = vmatprep.subr.mxu1 %v2922_v6 }
 0x288   :  { %v809_v11 = vpop.f32.mrf.mxu0  ;;  %v896_v14 = vpop.f32.mrf.mxu1 }
 0x289   :  { %v813_v17 = vadd.f32 %v809_v11, %v3281_v53  ;;  %v900_v19 = vadd.f32 %v896_v14, %v3311_v15  ;;  %v3605_v53 = vld [vmem:[#allocation8 + $0x58] sm:$0xff]  ;;  %v3623_v15 = vld [vmem:[#allocation8 + $0x40] sm:$0xff] }
 0x28a   :  { %v2403_v20 = vpop.f32.mrf.mxu0  ;;  %v2438_v22 = vpop.f32.mrf.mxu1 }
 0x28b   :  { %2472 = vmatmul.mubr.f32.vlgmr.msra.gmra.mxu0 %v813_v17  ;;  %2507 = vmatmul.mubr.f32.vlgmr.msra.gmra.mxu1 %v813_v17  ;;  %v3472_v24 = vadd.f32 %v900_v19, %v3389_v5 }
 0x28c   :  { %2510 = vmatpush3.msra.mxu0 %v3003_v4  ;;  %2545 = vmatpush3.msra.mxu1 %v3084_v21  ;;  %v3499_v4 = vld [vmem:[#allocation5 + $0x60] sm:$0xff]  ;;  %v3513_v21 = vld [vmem:[#allocation5 + $0x48] sm:$0xff] }
 0x28d   :  { %902 = vmax.xlane.f32.xlu1 %v3472_v24  ;;  %2511 = vmatprep.subr.mxu0 %v2922_v6 }
 0x28e   :  { %2546 = vmatprep.subr.mxu1 %v2922_v6  ;;  %2512 = vmatpush3.msra.mxu0 %v3012_v7  ;;  %v3501_v7 = vld [vmem:[#allocation5 + $0x58] sm:$0xff] }
 0x28f   :  { %2547 = vmatpush3.msra.mxu1 %v3092_v23  ;;  %2513 = vmatprep.subr.mxu0 %v2922_v6  ;;  %v3519_v23 = vld [vmem:[#allocation5 + $0x40] sm:$0xff] }
 0x290   :  { %2548 = vmatprep.subr.mxu1 %v2922_v6  ;;  %2514 = vmatpush3.msra.mxu0 %v3023_v9  ;;  %v3507_v9 = vld [vmem:[#allocation5 + $0x50] sm:$0xff] }
 0x291   :  { %2549 = vmatpush3.msra.mxu1 %v3100_v25  ;;  %2515 = vmatprep.subr.mxu0 %v2922_v6  ;;  %v3525_v25 = vld [vmem:[#allocation5 + $0x38] sm:$0xff] }
 0x292   :  { %2550 = vmatprep.subr.mxu1 %v2922_v6  ;;  %2541 = vmatprep.mubr.msk.f32.mxu0 %vm2923_vm1, %v2922_v6 }
 0x293   :  { %2551 = vmatpush3.msra.mxu1 %v3108_v27  ;;  %2576 = vmatprep.mubr.msk.f32.mxu1 %vm2923_vm1, %v2922_v6  ;;  %v3537_v27 = vld [vmem:[#allocation5 + $0x28] sm:$0xff] }
 0x294   :  { %2552 = vmatprep.subr.mxu1 %v2922_v6  ;;  %2516 = vmatpush3.msra.mxu0 %v3499_v4 }
 0x295   :  { %2553 = vmatpush3.msra.mxu1 %v3116_v29  ;;  %2517 = vmatprep.subr.mxu0 %v2922_v6  ;;  %v3549_v29 = vld [vmem:[#allocation5 + $0x18] sm:$0xff] }
 0x296   :  { %2554 = vmatprep.subr.mxu1 %v2922_v6  ;;  %2518 = vmatpush3.msra.mxu0 %v3501_v7 }
 0x297   :  { %2555 = vmatpush3.msra.mxu1 %v3124_v31  ;;  %2519 = vmatprep.subr.mxu0 %v2922_v6  ;;  %v3561_v31 = vld [vmem:[#allocation5 + $0x8] sm:$0xff] }
 0x298   :  { %2556 = vmatprep.subr.mxu1 %v2922_v6  ;;  %2520 = vmatpush3.msra.mxu0 %v3507_v9 }
 0x299   :  { %2557 = vmatpush3.msra.mxu1 %v3132_v33  ;;  %2521 = vmatprep.subr.mxu0 %v2922_v6 }
 0x29a   :  { %2558 = vmatprep.subr.mxu1 %v2922_v6  ;;  %2522 = vmatpush3.msra.mxu0 %v3513_v21 }
 0x29b   :  { %2559 = vmatpush3.msra.mxu1 %v3140_v35  ;;  %2523 = vmatprep.subr.mxu0 %v2922_v6 }
 0x29c   :  { %2560 = vmatprep.subr.mxu1 %v2922_v6  ;;  %2524 = vmatpush3.msra.mxu0 %v3519_v23 }
 0x29d   :  { %2561 = vmatpush3.msra.mxu1 %v3153_v38  ;;  %2525 = vmatprep.subr.mxu0 %v2922_v6 }
 0x29e   :  { %2562 = vmatprep.subr.mxu1 %v2922_v6  ;;  %2526 = vmatpush3.msra.mxu0 %v3525_v25 }
 0x29f   :  { %2563 = vmatpush3.msra.mxu1 %v3159_v39  ;;  %2527 = vmatprep.subr.mxu0 %v2922_v6 }
 0x2a0   :  { %2564 = vmatprep.subr.mxu1 %v2922_v6  ;;  %2528 = vmatpush3.msra.mxu0 %v3531_v26 }
 0x2a1   :  { %2565 = vmatpush3.msra.mxu1 %v3166_v40  ;;  %2529 = vmatprep.subr.mxu0 %v2922_v6 }
 0x2a2   :  { %2566 = vmatprep.subr.mxu1 %v2922_v6  ;;  %2530 = vmatpush3.msra.mxu0 %v3537_v27 }
 0x2a3   :  { %2567 = vmatpush3.msra.mxu1 %v3173_v41  ;;  %2531 = vmatprep.subr.mxu0 %v2922_v6  ;;  %v3579_v41 = vld [vmem:[#allocation5 + $0x78] sm:$0xff] }
 0x2a4   :  { %2568 = vmatprep.subr.mxu1 %v2922_v6  ;;  %2532 = vmatpush3.msra.mxu0 %v3543_v28 }
 0x2a5   :  { %2569 = vmatpush3.msra.mxu1 %v3179_v42  ;;  %2533 = vmatprep.subr.mxu0 %v2922_v6  ;;  %v3581_v42 = vld [vmem:[#allocation8 + $0x78] sm:$0xff] }
 0x2a6   :  { %2570 = vmatprep.subr.mxu1 %v2922_v6  ;;  %2534 = vmatpush3.msra.mxu0 %v3549_v29 }
 0x2a7   :  { %2571 = vmatpush3.msra.mxu1 %v3187_v43  ;;  %2535 = vmatprep.subr.mxu0 %v2922_v6  ;;  %v3583_v43 = vld [vmem:[#allocation5 + $0x70] sm:$0xff] }
 0x2a8   :  { %2572 = vmatprep.subr.mxu1 %v2922_v6  ;;  %2536 = vmatpush3.msra.mxu0 %v3555_v30 }
 0x2a9   :  { %2573 = vmatpush3.msra.mxu1 %v3222_v44  ;;  %2537 = vmatprep.subr.mxu0 %v2922_v6  ;;  %v3587_v44 = vld [vmem:[#allocation8 + $0x70] sm:$0xff] }
 0x2aa   :  { %2574 = vmatprep.subr.mxu1 %v2922_v6  ;;  %2538 = vmatpush3.msra.mxu0 %v3561_v31 }
 0x2ab   :  { %2575 = vmatpush3.msra.mxu1 %v3228_v45  ;;  %2539 = vmatprep.subr.mxu0 %v2922_v6  ;;  %v3591_v45 = vld [vmem:[#allocation5 + $0x68] sm:$0xff] }
 0x2ac   :  { %2614 = vmatprep.subr.mxu1 %v2922_v6  ;;  %2540 = vmatpush3.msra.mxu0 %v3565_v32 }
 0x2ad   :  { %2579 = vmatprep.subr.mxu0 %v2922_v6 }
 0x34b   :  { %v997_v33 = vpop.f32.mrf.mxu0  ;;  %v1084_v34 = vpop.f32.mrf.mxu1 }
 0x34c   :  { %v1001_v35 = vadd.f32 %v997_v33, %v3279_v51  ;;  %v1088_v36 = vadd.f32 %v1084_v34, %v3304_v12  ;;  %v3599_v51 = vld [vmem:[#allocation8 + $0x60] sm:$0xff]  ;;  %v3617_v12 = vld [vmem:[#allocation8 + $0x48] sm:$0xff] }
 0x34d   :  { %v2473_v38 = vpop.f32.mrf.mxu0  ;;  %v2508_v39 = vpop.f32.mrf.mxu1 }
 0x34e   :  { %2542 = vmatmul.mubr.f32.vlgmr.msra.gmra.mxu0 %v1001_v35  ;;  %2577 = vmatmul.mubr.f32.vlgmr.msra.gmra.mxu1 %v1001_v35  ;;  %v3572_v40 = vadd.f32 %v1088_v36, %v3389_v5 }
 0x34f   :  { %2611 = vmatprep.mubr.msk.f32.mxu0 %vm2923_vm1, %v2922_v6  ;;  %2646 = vmatprep.mubr.msk.f32.mxu1 %vm2923_vm1, %v2922_v6 }
 0x350   :  { %1090 = vmax.xlane.f32.xlu1 %v3572_v40  ;;  %2580 = vmatpush3.msra.mxu0 %v3579_v41 }
 0x351   :  { %2615 = vmatpush3.msra.mxu1 %v3581_v42  ;;  %2581 = vmatprep.subr.mxu0 %v2922_v6 }
 0x352   :  { %2616 = vmatprep.subr.mxu1 %v2922_v6  ;;  %2582 = vmatpush3.msra.mxu0 %v3583_v43 }
 0x353   :  { %2617 = vmatpush3.msra.mxu1 %v3587_v44  ;;  %2583 = vmatprep.subr.mxu0 %v2922_v6 }
 0x354   :  { %2618 = vmatprep.subr.mxu1 %v2922_v6  ;;  %2584 = vmatpush3.msra.mxu0 %v3591_v45 }
 0x355   :  { %2619 = vmatpush3.msra.mxu1 %v3593_v48  ;;  %2585 = vmatprep.subr.mxu0 %v2922_v6 }
 0x356   :  { %2620 = vmatprep.subr.mxu1 %v2922_v6  ;;  %2586 = vmatpush3.msra.mxu0 %v3499_v4 }
 0x357   :  { %2621 = vmatpush3.msra.mxu1 %v3599_v51  ;;  %2587 = vmatprep.subr.mxu0 %v2922_v6 }
 0x358   :  { %2622 = vmatprep.subr.mxu1 %v2922_v6  ;;  %2588 = vmatpush3.msra.mxu0 %v3501_v7 }
 0x359   :  { %2623 = vmatpush3.msra.mxu1 %v3605_v53  ;;  %2589 = vmatprep.subr.mxu0 %v2922_v6 }
 0x35a   :  { %2624 = vmatprep.subr.mxu1 %v2922_v6  ;;  %2590 = vmatpush3.msra.mxu0 %v3507_v9 }
 0x35b   :  { %2625 = vmatpush3.msra.mxu1 %v3611_v0  ;;  %2591 = vmatprep.subr.mxu0 %v2922_v6 }
 0x35c   :  { %2626 = vmatprep.subr.mxu1 %v2922_v6  ;;  %2592 = vmatpush3.msra.mxu0 %v3513_v21 }
 0x35d   :  { %2627 = vmatpush3.msra.mxu1 %v3617_v12  ;;  %2593 = vmatprep.subr.mxu0 %v2922_v6 }
 0x35e   :  { %2628 = vmatprep.subr.mxu1 %v2922_v6  ;;  %2594 = vmatpush3.msra.mxu0 %v3519_v23 }
 0x35f   :  { %2629 = vmatpush3.msra.mxu1 %v3623_v15  ;;  %2595 = vmatprep.subr.mxu0 %v2922_v6 }
 0x360   :  { %2630 = vmatprep.subr.mxu1 %v2922_v6  ;;  %2596 = vmatpush3.msra.mxu0 %v3525_v25 }
 0x361   :  { %2631 = vmatpush3.msra.mxu1 %v3629_v50  ;;  %2597 = vmatprep.subr.mxu0 %v2922_v6 }
 0x362   :  { %2632 = vmatprep.subr.mxu1 %v2922_v6  ;;  %2598 = vmatpush3.msra.mxu0 %v3531_v26 }
 0x363   :  { %2633 = vmatpush3.msra.mxu1 %v3635_v54  ;;  %2599 = vmatprep.subr.mxu0 %v2922_v6 }
 0x364   :  { %2634 = vmatprep.subr.mxu1 %v2922_v6  ;;  %2600 = vmatpush3.msra.mxu0 %v3537_v27 }
 0x365   :  { %2635 = vmatpush3.msra.mxu1 %v3641_v56  ;;  %2601 = vmatprep.subr.mxu0 %v2922_v6 }
 0x366   :  { %2636 = vmatprep.subr.mxu1 %v2922_v6  ;;  %2602 = vmatpush3.msra.mxu0 %v3543_v28 }
 0x367   :  { %2637 = vmatpush3.msra.mxu1 %v3647_v58  ;;  %2603 = vmatprep.subr.mxu0 %v2922_v6 }
 0x368   :  { %2638 = vmatprep.subr.mxu1 %v2922_v6  ;;  %2604 = vmatpush3.msra.mxu0 %v3549_v29 }
 0x369   :  { %2639 = vmatpush3.msra.mxu1 %v3653_v60  ;;  %2605 = vmatprep.subr.mxu0 %v2922_v6 }
 0x36a   :  { %2640 = vmatprep.subr.mxu1 %v2922_v6  ;;  %2606 = vmatpush3.msra.mxu0 %v3555_v30 }
 0x36b   :  { %2641 = vmatpush3.msra.mxu1 %v3659_v62  ;;  %2607 = vmatprep.subr.mxu0 %v2922_v6 }
 0x36c   :  { %2642 = vmatprep.subr.mxu1 %v2922_v6  ;;  %2608 = vmatpush3.msra.mxu0 %v3561_v31 }
 0x36d   :  { %2609 = vmatprep.subr.mxu0 %v2922_v6  ;;  %2643 = vmatpush3.msra.mxu1 %v3673_v1 }
 0x36e   :  { %2610 = vmatpush3.msra.mxu0 %v3565_v32  ;;  %2644 = vmatprep.subr.mxu1 %v2922_v6 }
 0x36f   :  { %2649 = vmatprep.subr.mxu0 %v2922_v6  ;;  %2645 = vmatpush3.msra.mxu1 %v3677_v3 }
 0x370   :  { %2684 = vmatprep.subr.mxu1 %v2922_v6 }
 0x40e   :  { %v1185_v10 = vpop.f32.mrf.mxu0  ;;  %v1272_v13 = vpop.f32.mrf.mxu1 }
 0x40f   :  { %v1189_v16 = vadd.f32 %v1185_v10, %v3285_v57  ;;  %v1276_v37 = vadd.f32 %v1272_v13, %v3325_v46 }
 0x410   :  { %v2543_v47 = vpop.f32.mrf.mxu0  ;;  %v2578_v63 = vpop.f32.mrf.mxu1 }
 0x411   :  { %2612 = vmatmul.mubr.f32.vlgmr.msra.gmra.mxu0 %v1189_v16  ;;  %2647 = vmatmul.mubr.f32.vlgmr.msra.gmra.mxu1 %v1189_v16  ;;  %v3684_v11 = vadd.f32 %v1276_v37, %v3389_v5 }
 0x412   :  { %2650 = vmatpush3.msra.mxu0 %v3579_v41  ;;  %2685 = vmatpush3.msra.mxu1 %v3581_v42 }
 0x413   :  { %1278 = vmax.xlane.f32.xlu0 %v3684_v11  ;;  %2651 = vmatprep.subr.mxu0 %v2922_v6 }
 0x414   :  { %2686 = vmatprep.subr.mxu1 %v2922_v6  ;;  %2652 = vmatpush3.msra.mxu0 %v3583_v43 }
 0x415   :  { %2687 = vmatpush3.msra.mxu1 %v3587_v44  ;;  %2653 = vmatprep.subr.mxu0 %v2922_v6 }
 0x416   :  { %2688 = vmatprep.subr.mxu1 %v2922_v6  ;;  %2654 = vmatpush3.msra.mxu0 %v3591_v45 }
 0x417   :  { %2689 = vmatpush3.msra.mxu1 %v3593_v48  ;;  %2655 = vmatprep.subr.mxu0 %v2922_v6 }
 0x418   :  { %2690 = vmatprep.subr.mxu1 %v2922_v6  ;;  %2656 = vmatpush3.msra.mxu0 %v3499_v4 }
 0x419   :  { %2691 = vmatpush3.msra.mxu1 %v3599_v51  ;;  %2657 = vmatprep.subr.mxu0 %v2922_v6 }
 0x41a   :  { %2692 = vmatprep.subr.mxu1 %v2922_v6  ;;  %2658 = vmatpush3.msra.mxu0 %v3501_v7 }
 0x41b   :  { %2693 = vmatpush3.msra.mxu1 %v3605_v53  ;;  %2659 = vmatprep.subr.mxu0 %v2922_v6 }
 0x41c   :  { %2694 = vmatprep.subr.mxu1 %v2922_v6  ;;  %2660 = vmatpush3.msra.mxu0 %v3507_v9 }
 0x41d   :  { %2695 = vmatpush3.msra.mxu1 %v3611_v0  ;;  %2661 = vmatprep.subr.mxu0 %v2922_v6 }
 0x41e   :  { %2696 = vmatprep.subr.mxu1 %v2922_v6  ;;  %2662 = vmatpush3.msra.mxu0 %v3513_v21 }
 0x41f   :  { %2697 = vmatpush3.msra.mxu1 %v3617_v12  ;;  %2663 = vmatprep.subr.mxu0 %v2922_v6 }
 0x420   :  { %2698 = vmatprep.subr.mxu1 %v2922_v6  ;;  %2664 = vmatpush3.msra.mxu0 %v3519_v23 }
 0x421   :  { %2699 = vmatpush3.msra.mxu1 %v3623_v15  ;;  %2665 = vmatprep.subr.mxu0 %v2922_v6 }
 0x422   :  { %2700 = vmatprep.subr.mxu1 %v2922_v6  ;;  %2666 = vmatpush3.msra.mxu0 %v3525_v25 }
 0x423   :  { %2701 = vmatpush3.msra.mxu1 %v3629_v50  ;;  %2667 = vmatprep.subr.mxu0 %v2922_v6 }
 0x424   :  { %2702 = vmatprep.subr.mxu1 %v2922_v6  ;;  %2668 = vmatpush3.msra.mxu0 %v3531_v26 }
 0x425   :  { %2703 = vmatpush3.msra.mxu1 %v3635_v54  ;;  %2669 = vmatprep.subr.mxu0 %v2922_v6 }
 0x426   :  { %2704 = vmatprep.subr.mxu1 %v2922_v6  ;;  %2670 = vmatpush3.msra.mxu0 %v3537_v27 }
 0x427   :  { %2705 = vmatpush3.msra.mxu1 %v3641_v56  ;;  %2671 = vmatprep.subr.mxu0 %v2922_v6 }
 0x428   :  { %2706 = vmatprep.subr.mxu1 %v2922_v6  ;;  %2672 = vmatpush3.msra.mxu0 %v3543_v28 }
 0x429   :  { %2707 = vmatpush3.msra.mxu1 %v3647_v58  ;;  %2673 = vmatprep.subr.mxu0 %v2922_v6 }
 0x42a   :  { %2708 = vmatprep.subr.mxu1 %v2922_v6  ;;  %2674 = vmatpush3.msra.mxu0 %v3549_v29 }
 0x42b   :  { %2709 = vmatpush3.msra.mxu1 %v3653_v60  ;;  %2675 = vmatprep.subr.mxu0 %v2922_v6 }
 0x42c   :  { %2710 = vmatprep.subr.mxu1 %v2922_v6  ;;  %2676 = vmatpush3.msra.mxu0 %v3555_v30 }
 0x42d   :  { %2711 = vmatpush3.msra.mxu1 %v3659_v62  ;;  %2677 = vmatprep.subr.mxu0 %v2922_v6 }
 0x42e   :  { %2712 = vmatprep.subr.mxu1 %v2922_v6  ;;  %2678 = vmatpush3.msra.mxu0 %v3561_v31 }
 0x42f   :  { %2713 = vmatpush3.msra.mxu1 %v3673_v1  ;;  %2679 = vmatprep.subr.mxu0 %v2922_v6 }
 0x430   :  { %2714 = vmatprep.subr.mxu1 %v2922_v6  ;;  %2680 = vmatpush3.msra.mxu0 %v3565_v32 }
 0x431   :  { %2681 = vmatprep.mubr.msk.f32.mxu0 %vm2923_vm1, %v2922_v6  ;;  %2715 = vmatpush3.msra.mxu1 %v3677_v3 }
 0x432   :  { %2716 = vmatprep.mubr.msk.f32.mxu1 %vm2923_vm1, %v2922_v6  ;;  %2719 = vmatprep.subr.mxu0 %v2922_v6 }
 0x433   :  { %2754 = vmatprep.subr.mxu1 %v2922_v6 }
 0x4d1   :  { %v1373_v57 = vpop.f32.mrf.mxu0  ;;  %v1460_v46 = vpop.f32.mrf.mxu1 }
 0x4d2   :  { %v1377_v14 = vadd.f32 %v1373_v57, %v3283_v55  ;;  %v1464_v17 = vadd.f32 %v1460_v46, %v3318_v18  ;;  %v527_v55 = vpop.xlane.xlu0 %526 }
 0x4d3   :  { %v2613_v19 = vpop.f32.mrf.mxu0  ;;  %v2648_v20 = vpop.f32.mrf.mxu1  ;;  %v528_v18 = vsub.f32 %v3392_v8, %v527_v55 }
 0x4d4   :  { %2682 = vmatmul.mubr.f32.vlgmr.msra.gmra.mxu0 %v1377_v14  ;;  %2717 = vmatmul.mubr.f32.vlgmr.msra.gmra.mxu1 %v1377_v14  ;;  %v3758_v22 = vadd.f32 %v1464_v17, %v3389_v5 }
 0x4d5   :  { %2720 = vmatpush3.msra.mxu0 %v3579_v41  ;;  %2755 = vmatpush3.msra.mxu1 %v3581_v42 }
 0x4d6   :  { %1466 = vmax.xlane.f32.xlu1 %v3758_v22  ;;  %2721 = vmatprep.subr.mxu0 %v2922_v6 }
 0x4d7   :  { %2756 = vmatprep.subr.mxu1 %v2922_v6  ;;  %2722 = vmatpush3.msra.mxu0 %v3583_v43 }
 0x4d8   :  { %2757 = vmatpush3.msra.mxu1 %v3587_v44  ;;  %2723 = vmatprep.subr.mxu0 %v2922_v6 }
 0x4d9   :  { %2758 = vmatprep.subr.mxu1 %v2922_v6  ;;  %2724 = vmatpush3.msra.mxu0 %v3591_v45 }
 0x4da   :  { %2759 = vmatpush3.msra.mxu1 %v3593_v48  ;;  %2725 = vmatprep.subr.mxu0 %v2922_v6 }
 0x4db   :  { %2760 = vmatprep.subr.mxu1 %v2922_v6  ;;  %2726 = vmatpush3.msra.mxu0 %v3499_v4  ;;  %v715_v4 = vpop.xlane.xlu0 %714 }
 0x4dc   :  { %2761 = vmatpush3.msra.mxu1 %v3599_v51  ;;  %2727 = vmatprep.subr.mxu0 %v2922_v6 }
 0x4dd   :  { %2762 = vmatprep.subr.mxu1 %v2922_v6  ;;  %2728 = vmatpush3.msra.mxu0 %v3501_v7  ;;  %v903_v7 = vpop.xlane.xlu1 %902 }
 0x4de   :  { %2763 = vmatpush3.msra.mxu1 %v3605_v53  ;;  %2729 = vmatprep.subr.mxu0 %v2922_v6 }
 0x4df   :  { %2764 = vmatprep.subr.mxu1 %v2922_v6  ;;  %2730 = vmatpush3.msra.mxu0 %v3507_v9  ;;  %v529_v9 = vmul.f32 1.442695, %v528_v18 }
 0x4e0   :  { %2765 = vmatpush3.msra.mxu1 %v3611_v0  ;;  %2731 = vmatprep.subr.mxu0 %v2922_v6 }
 0x4e1   :  { %2766 = vmatprep.subr.mxu1 %v2922_v6  ;;  %2732 = vmatpush3.msra.mxu0 %v3513_v21  ;;  %v904_v21 = vsub.f32 %v3472_v24, %v903_v7  ;;  %2798 = vpow2.f32 %v529_v9 }
 0x4e2   :  { %2767 = vmatpush3.msra.mxu1 %v3617_v12  ;;  %2733 = vmatprep.subr.mxu0 %v2922_v6 }
 0x4e3   :  { %2768 = vmatprep.subr.mxu1 %v2922_v6  ;;  %2734 = vmatpush3.msra.mxu0 %v3519_v23  ;;  %v1279_v23 = vpop.xlane.xlu0 %1278 }
 0x4e4   :  { %2769 = vmatpush3.msra.mxu1 %v3623_v15  ;;  %2735 = vmatprep.subr.mxu0 %v2922_v6  ;;  %v716_v15 = vsub.f32 %v3398_v2, %v715_v4 }
 0x4e5   :  { %2770 = vmatprep.subr.mxu1 %v2922_v6  ;;  %2736 = vmatpush3.msra.mxu0 %v3525_v25  ;;  %v905_v25 = vmul.f32 1.442695, %v904_v21 }
 0x4e6   :  { %2771 = vmatpush3.msra.mxu1 %v3629_v50  ;;  %2737 = vmatprep.subr.mxu0 %v2922_v6  ;;  %v1091_v50 = vpop.xlane.xlu1 %1090 }
 0x4e7   :  { %2772 = vmatprep.subr.mxu1 %v2922_v6  ;;  %2738 = vmatpush3.msra.mxu0 %v3531_v26  ;;  %v1280_v26 = vsub.f32 %v3684_v11, %v1279_v23  ;;  %2800 = vpow2.f32 %v905_v25 }
 0x4e8   :  { %2773 = vmatpush3.msra.mxu1 %v3635_v54  ;;  %2739 = vmatprep.subr.mxu0 %v2922_v6  ;;  %v717_v54 = vmul.f32 1.442695, %v716_v15 }
 0x4e9   :  { %2774 = vmatprep.subr.mxu1 %v2922_v6  ;;  %2740 = vmatpush3.msra.mxu0 %v3537_v27  ;;  %v1281_v27 = vmul.f32 1.442695, %v1280_v26 }
 0x4ea   :  { %2775 = vmatpush3.msra.mxu1 %v3641_v56  ;;  %2741 = vmatprep.subr.mxu0 %v2922_v6  ;;  %v1092_v56 = vsub.f32 %v3572_v40, %v1091_v50 }
 0x4eb   :  { %2776 = vmatprep.subr.mxu1 %v2922_v6  ;;  %2742 = vmatpush3.msra.mxu0 %v3543_v28  ;;  %2802 = vpow2.f32 %v1281_v27 }
 0x4ec   :  { %2777 = vmatpush3.msra.mxu1 %v3647_v58  ;;  %2743 = vmatprep.subr.mxu0 %v2922_v6 }
 0x4ed   :  { %2778 = vmatprep.subr.mxu1 %v2922_v6  ;;  %2744 = vmatpush3.msra.mxu0 %v3549_v29 }
 0x4ee   :  { %2779 = vmatpush3.msra.mxu1 %v3653_v60  ;;  %2745 = vmatprep.subr.mxu0 %v2922_v6  ;;  %v1093_v60 = vmul.f32 1.442695, %v1092_v56 }
 0x4ef   :  { %2780 = vmatprep.subr.mxu1 %v2922_v6  ;;  %2746 = vmatpush3.msra.mxu0 %v3555_v30 }
 0x4f0   :  { %2781 = vmatpush3.msra.mxu1 %v3659_v62  ;;  %2747 = vmatprep.subr.mxu0 %v2922_v6 }
 0x4f1   :  { %2782 = vmatprep.subr.mxu1 %v2922_v6  ;;  %2748 = vmatpush3.msra.mxu0 %v3561_v31 }
 0x4f2   :  { %2783 = vmatpush3.msra.mxu1 %v3673_v1  ;;  %2749 = vmatprep.subr.mxu0 %v2922_v6 }
 0x4f3   :  { %2784 = vmatprep.subr.mxu1 %v2922_v6  ;;  %2750 = vmatpush3.msra.mxu0 %v3565_v32  ;;  %v2799_v32 = vpop.eup %2798 }
 0x4f4   :  { %2751 = vmatprep.mubr.msk.f32.mxu0 %vm2923_vm1, %v2922_v6  ;;  %2785 = vmatpush3.msra.mxu1 %v3677_v3  ;;  %v2801_v33 = vpop.eup %2800 }
 0x4f5   :  { %2786 = vmatprep.mubr.msk.f32.mxu1 %vm2923_vm1, %v2922_v6 }
 0x4f8   :  { %v2803_v34 = vpop.eup %2802 }
 0x55f   :  { %v1467_v58 = vpop.xlane.xlu1 %1466 }
 0x560   :  { %v1468_v62 = vsub.f32 %v3758_v22, %v1467_v58 }
 0x562   :  { %v1469_v1 = vmul.f32 1.442695, %v1468_v62 }
 0x594   :  { %v1561_v28 = vpop.f32.mrf.mxu0  ;;  %v1648_v29 = vpop.f32.mrf.mxu1 }
 0x595   :  { %v1565_v30 = vadd.f32 %v1561_v28, %v3289_v61  ;;  %v1652_v6 = vadd.f32 %v1648_v29, %v3339_v52 }
 0x596   :  { %v2683_v31 = vpop.f32.mrf.mxu0  ;;  %v2718_v8 = vpop.f32.mrf.mxu1 }
 0x597   :  { %2752 = vmatmul.mubr.f32.vlgmr.msra.gmra.mxu0 %v1565_v30  ;;  %2787 = vmatmul.mubr.f32.vlgmr.msra.gmra.mxu1 %v1565_v30  ;;  %v1653_v24 = vadd.f32 %v1652_v6, %v3389_v5 }
 0x599   :  { %1654 = vmax.xlane.f32.xlu0 %v1653_v24 }
 0x59d   :  { %531 = vadd.xlane.f32.xlu0 %v2799_v32 }
 0x5a1   :  { %907 = vadd.xlane.f32.xlu0 %v2801_v33 }
 0x5a5   :  { %1283 = vadd.xlane.f32.xlu0 %v2803_v34 }
 0x622   :  { %v1655_v35 = vpop.xlane.xlu0 %1654 }
 0x623   :  { %v1656_v36 = vsub.f32 %v1653_v24, %v1655_v35 }
 0x625   :  { %v1657_v38 = vmul.f32 1.442695, %v1656_v36 }
 0x626   :  { %v532_v61 = vpop.xlane.xlu0 %531 }
 0x627   :  { %2804 = vpow2.f32 %v1657_v38 }
 0x628   :  { %2806 = vlog2.f32 %v532_v61 }
 0x62a   :  { %v908_v52 = vpop.xlane.xlu0 %907 }
 0x62b   :  { %2808 = vlog2.f32 %v908_v52 }
 0x62e   :  { %v1284_v39 = vpop.xlane.xlu0 %1283 }
 0x62f   :  { %2810 = vlog2.f32 %v1284_v39 }
 0x630   :  { %2812 = vpow2.f32 %v717_v54 }
 0x631   :  { %2814 = vpow2.f32 %v1093_v60 }
 0x632   :  { %2816 = vpow2.f32 %v1469_v1 }
 0x634   :  { %v2805_v41 = vpop.eup %2804 }
 0x635   :  { %v2807_v42 = vpop.eup %2806  ;;  %1659 = vadd.xlane.f32.xlu0 %v2805_v41 }
 0x636   :  { %v534_v43 = vmul.f32 0.6931472, %v2807_v42 }
 0x638   :  { %v2809_v44 = vpop.eup %2808  ;;  %v535_v45 = vsub.f32 %v528_v18, %v534_v43 }
 0x639   :  { %v910_v48 = vmul.f32 0.6931472, %v2809_v44 }
 0x63a   :  { %536 = vst [vmem:[#allocation10] sm:$0xff] %v535_v45 }
 0x63b   :  { %v911_v51 = vsub.f32 %v904_v21, %v910_v48 }
 0x63c   :  { %v2811_v53 = vpop.eup %2810 }
 0x63d   :  { %912 = vst [vmem:[#allocation10 + $0x10] sm:$0xff] %v911_v51  ;;  %v1286_v0 = vmul.f32 0.6931472, %v2811_v53  ;;  %v2813_v40 = vpop.eup %2812 }
 0x63e   :  { %v2815_v63 = vpop.eup %2814 }
 0x63f   :  { %v1287_v12 = vsub.f32 %v1280_v26, %v1286_v0  ;;  %v2817_v11 = vpop.eup %2816 }
 0x641   :  { %1288 = vst [vmem:[#allocation10 + $0x20] sm:$0xff] %v1287_v12 }
 0x657   :  { %v1749_v3 = vpop.f32.mrf.mxu0  ;;  %v1836_v10 = vpop.f32.mrf.mxu1 }
 0x658   :  { %v1753_v13 = vadd.f32 %v1749_v3, %v3287_v59  ;;  %v1840_v16 = vadd.f32 %v1836_v10, %v3332_v49 }
 0x659   :  { %v2753_v37 = vpop.f32.mrf.mxu0  ;;  %v2788_v47 = vpop.f32.mrf.mxu1 }
 0x65a   :  { %1854 = vst [vmem:[#allocation11] sm:$0xff] %v1753_v13  ;;  %v1841_v2 = vadd.f32 %v1840_v16, %v3389_v5 }
 0x65c   :  { %1842 = vmax.xlane.f32.xlu1 %v1841_v2 }
 0x660   :  { %719 = vadd.xlane.f32.xlu1 %v2813_v40 }
 0x664   :  { %1095 = vadd.xlane.f32.xlu1 %v2815_v63 }
 0x668   :  { %1471 = vadd.xlane.f32.xlu1 %v2817_v11 }
 0x6be   :  { %v1660_v57 = vpop.xlane.xlu0 %1659 }
 0x6bf   :  { %2818 = vlog2.f32 %v1660_v57 }
 0x6cc   :  { %v2819_v46 = vpop.eup %2818 }
 0x6cd   :  { %v1662_v14 = vmul.f32 0.6931472, %v2819_v46 }
 0x6cf   :  { %v1663_v59 = vsub.f32 %v1656_v36, %v1662_v14 }
 0x6d1   :  { %1664 = vst [vmem:[#allocation10 + $0x30] sm:$0xff] %v1663_v59 }
 0x6e5   :  { %v1843_v49 = vpop.xlane.xlu1 %1842 }
 0x6e6   :  { %v1844_v17 = vsub.f32 %v1841_v2, %v1843_v49 }
 0x6e8   :  { %v1845_v19 = vmul.f32 1.442695, %v1844_v17 }
 0x6e9   :  { %v720_v20 = vpop.xlane.xlu1 %719 }
 0x6ea   :  { %2820 = vpow2.f32 %v1845_v19 }
 0x6eb   :  { %2822 = vlog2.f32 %v720_v20 }
 0x6ed   :  { %v1096_v5 = vpop.xlane.xlu1 %1095 }
 0x6ee   :  { %2824 = vlog2.f32 %v1096_v5 }
 0x6f1   :  { %v1472_v22 = vpop.xlane.xlu1 %1471 }
 0x6f2   :  { %2826 = vlog2.f32 %v1472_v22 }
 0x6f7   :  { %v2821_v55 = vpop.eup %2820 }
 0x6f8   :  { %v2823_v18 = vpop.eup %2822  ;;  %1847 = vadd.xlane.f32.xlu1 %v2821_v55 }
 0x6f9   :  { %v722_v4 = vmul.f32 0.6931472, %v2823_v18 }
 0x6fb   :  { %v2825_v7 = vpop.eup %2824  ;;  %v723_v9 = vsub.f32 %v716_v15, %v722_v4 }
 0x6fc   :  { %v1098_v21 = vmul.f32 0.6931472, %v2825_v7 }
 0x6fd   :  { %724 = vst [vmem:[#allocation10 + $0x8] sm:$0xff] %v723_v9 }
 0x6fe   :  { %v1099_v23 = vsub.f32 %v1092_v56, %v1098_v21 }
 0x6ff   :  { %v2827_v25 = vpop.eup %2826 }
 0x700   :  { %1100 = vst [vmem:[#allocation10 + $0x18] sm:$0xff] %v1099_v23  ;;  %v1474_v26 = vmul.f32 0.6931472, %v2827_v25 }
 0x702   :  { %v1475_v27 = vsub.f32 %v1468_v62, %v1474_v26 }
 0x704   :  { %1476 = vst [vmem:[#allocation10 + $0x28] sm:$0xff] %v1475_v27 }
 0x705   :  { %2881 = shalt.err (!%p2878_p0)
}
 0x706   :  { %1876 = dma.vmem_to_hbm [thread:$0]  %s1874_s24, 128, %s3857_s9, [#allocation12]  }
 0x707   :  { %s2926_s27 = smov [#allocation10]  }
 0x708   :  { %s1860_s2 = sshll.u32 %s2926_s27, 4  ;;  %s1861_s2 = int_to_ptr.vmem [resolvable:$true] %s1860_s2 }
 0x709   :  { %s2890_s28 = scalar_lea.vmem %s1861_s2, 1024  ;;  %p2895_p2 = scmp.lt.s32.totalorder %s1861_s2, %s1861_s2 }
 0x70a   :  { %p2891_p1 = scmp.ne.s32.totalorder %s1861_s2, %s2890_s28  ;;  %p2896_p3 = scmp.lt.s32.totalorder %s2890_s28, %s2890_s28 }
 0x70c   :  { %p2897_p4 = por %p2896_p3, %p2895_p2 }
 0x70e   :  { %p2898_p5 = pnand %p2897_p4, %p2891_p1 }
 0x781   :  { %v1848_v28 = vpop.xlane.xlu1 %1847 }
 0x782   :  { %2828 = vlog2.f32 %v1848_v28 }
 0x78f   :  { %v2829_v29 = vpop.eup %2828 }
 0x790   :  { %v1850_v30 = vmul.f32 0.6931472, %v2829_v29 }
 0x792   :  { %v1851_v6 = vsub.f32 %v1844_v17, %v1850_v30 }
 0x794   :  { %1852 = vst [vmem:[#allocation10 + $0x38] sm:$0xff] %v1851_v6 }
 0x795   :  { %2901 = shalt.err (!%p2898_p5)
}
 0x796   :  { %1866 = dma.vmem_to_hbm [thread:$0]  %s1861_s2, 1024, %s3856_s8, [#allocation7], %s2919_s12, %s2919_s12, %s2920_s13  }
 0x797   :  { %2914 = dma.done.wait [#allocation7], 1024  }
 0x798   :  { %2915 = vsyncadd [#allocation7], 4294966272 }
 0x799   :  { %2916 = dma.done.wait [#allocation12], 128  }
 0x79a   :  { %2917 = vsyncadd [#allocation12], 4294967168 }
 0x79b   :  { %1883 = vsyncpa [#allocation6], 1 }
 0x79c   :  { %1884 = vsyncpa [#allocation9], 1 }
 0x79d   :  { %1885 = vsyncpa [#allocation7], 1 }
 0x79e   :  { %1886 = vsyncpa [#allocation12], 1 }

</bundles_post_ra>
